<compile_context>
chip_gen: v7x
topology: tpu7x:2x2x1
jax: 0.10.0
libtpu: 0.0.40
codegen_flags: <defaults>
</compile_context>

<pallas_src>
import functools

import jax
import jax.numpy as jnp
from jax.experimental import pallas as pl
from jax.experimental.pallas import tpu as pltpu


# ------------------------------ in-kernel helpers ------------------------------

def _linear(x, w_ref, b_ref):
    # x: (T, Din) compute dtype; W: (Din, Dout) compute dtype; b: (1, Dout) f32.
    return jnp.dot(x, w_ref[...], preferred_element_type=jnp.float32) + b_ref[...]


def _split_heads(x, num_heads, head_dim, dtype):
    # (T, E) -> (H, T, hd): static lane slices stacked on a new leading (untiled)
    # axis; everything downstream stays head-batched (single dot_generals).
    return jnp.stack(
        [x[:, h * head_dim:(h + 1) * head_dim] for h in range(num_heads)],
        axis=0).astype(dtype)


def _qk_logits(v, l, wq_ref, bq_ref, wk_ref, bk_ref, num_heads, head_dim):
    cd = v.dtype
    qh = _split_heads(_linear(v, wq_ref, bq_ref), num_heads, head_dim, cd)  # (H,Tv,hd)
    kh = _split_heads(_linear(l, wk_ref, bk_ref), num_heads, head_dim, cd)  # (H,Tl,hd)
    # The query scale is folded into wq/bq at parameter-prep time.
    return jnp.einsum('hqd,hkd->hqk', qh, kh, preferred_element_type=jnp.float32)


# ------------------------- pass 1: global logits max ---------------------------

def _logits_max_kernel(v_ref, l_ref, wq_ref, bq_ref, wk_ref, bk_ref, max_ref,
                       *, num_heads, head_dim):
    logits = _qk_logits(v_ref[...], l_ref[...], wq_ref, bq_ref, wk_ref, bk_ref,
                        num_heads, head_dim)
    max_ref[...] = jnp.full(max_ref.shape, jnp.max(logits), jnp.float32)


# --------------------------- pass 2: full attention ----------------------------

def _bi_mha_kernel(gmax_ref, v_ref, l_ref,
                   wq_ref, bq_ref, wk_ref, bk_ref,
                   wvv_ref, bvv_ref, wvl_ref, bvl_ref,
                   wov_ref, bov_ref, wol_ref, bol_ref,
                   out_v_ref, out_l_ref, *, num_heads, head_dim):
    H, hd = num_heads, head_dim
    v = v_ref[...]                        # (Tv, Dv) compute dtype
    l = l_ref[...]                        # (Tl, Dl) compute dtype
    cd = v.dtype
    approx = cd != jnp.float32            # approx EUP reciprocal only in bf16 mode

    a = _qk_logits(v, l, wq_ref, bq_ref, wk_ref, bk_ref, H, hd)     # (H,Tv,Tl) f32
    # stable_softmax_2d: subtract the global max (pass 1), then clamp.
    a = jnp.clip(a - gmax_ref[0, 0], -50000.0, 50000.0)

    vvh = _split_heads(_linear(v, wvv_ref, bvv_ref), H, hd, cd)     # (H,Tv,hd)
    vlh = _split_heads(_linear(l, wvl_ref, bvl_ref), H, hd, cd)     # (H,Tl,hd)

    # v->l attention: softmax over the text (lane) axis.
    # TODO(synk): attention_mask_l additive masking not implemented (example uses None).
    e_v = jnp.exp(a - jnp.max(a, axis=-1, keepdims=True))
    p_v = e_v * pl.reciprocal(jnp.sum(e_v, axis=-1, keepdims=True), approx=approx)

    # l->v attention: softmax over the visual (sublane) axis computed on the
    # *untransposed* logits (per-column max / sum); only the final probabilities
    # get one batched transpose to feed a canonical batched matmul.
    a_l = jnp.clip(a - jnp.max(a, axis=1, keepdims=True), -50000.0, 50000.0)
    e_l = jnp.exp(a_l)
    p_l = e_l * pl.reciprocal(jnp.sum(e_l, axis=1, keepdims=True), approx=approx)

    # TODO(synk): dropout(p=0.1) applies only in training; eval path is identity.
    out_v_h = jnp.einsum('hqk,hkd->hqd', p_v.astype(cd), vlh,
                         preferred_element_type=jnp.float32)        # (H,Tv,hd)
    p_l_t = jnp.swapaxes(p_l, 1, 2).astype(cd)                      # (H,Tl,Tv)
    out_l_h = jnp.einsum('hkq,hqd->hkd', p_l_t, vvh,
                         preferred_element_type=jnp.float32)        # (H,Tl,hd)

    # Output projections: W_out pre-reshaped to (H, hd, D); per-head batched matmul
    # + leading-axis sum == concat(heads) @ W_out, with no lane-dim concatenate.
    out_v = jnp.einsum('hqd,hde->hqe', out_v_h.astype(cd), wov_ref[...],
                       preferred_element_type=jnp.float32)          # (H,Tv,Dv)
    out_l = jnp.einsum('hkd,hde->hke', out_l_h.astype(cd), wol_ref[...],
                       preferred_element_type=jnp.float32)          # (H,Tl,Dl)
    out_v_ref[...] = jnp.sum(out_v, axis=0) + bov_ref[...]
    out_l_ref[...] = jnp.sum(out_l, axis=0) + bol_ref[...]


# ------------------------- one-time parameter preparation ----------------------

def prepare_params(params, *, num_heads, compute_dtype=jnp.float32):
    """Host-side, one-time prep: transpose weights to (in, out), reshape output
    projections to (H, hd, D), fold the query scale into v_proj, cast matmul
    operands to `compute_dtype` (bf16 recommended on v6e/v7x), keep biases f32."""
    E = params['v_proj_w'].shape[0]        # torch Linear weight layout: (out, in)
    head_dim = E // num_heads
    scale = float(head_dim) ** -0.5

    def wt(w, s=1.0):                      # (out, in) -> (in, out)
        return (jnp.asarray(w, jnp.float32).T * s).astype(compute_dtype)

    def b2(b, s=1.0):                      # (out,) -> (1, out), f32
        return (jnp.asarray(b, jnp.float32) * s).reshape(1, -1)

    def wt_out(w):                         # (D, E) -> (E, D) -> (H, hd, D)
        D = w.shape[0]
        return (jnp.asarray(w, jnp.float32).T.reshape(num_heads, head_dim, D)
                .astype(compute_dtype))

    return {
        'wq': wt(params['v_proj_w'], scale), 'bq': b2(params['v_proj_b'], scale),
        'wk': wt(params['l_proj_w']), 'bk': b2(params['l_proj_b']),
        'wvv': wt(params['values_v_proj_w']), 'bvv': b2(params['values_v_proj_b']),
        'wvl': wt(params['values_l_proj_w']), 'bvl': b2(params['values_l_proj_b']),
        'wov': wt_out(params['out_v_proj_w']), 'bov': b2(params['out_v_proj_b']),
        'wol': wt_out(params['out_l_proj_w']), 'bol': b2(params['out_l_proj_b']),
    }


# --------------------------------- entry point ---------------------------------

@functools.partial(jax.jit, static_argnames=('num_heads',))
def bi_multi_head_attention(v, l, prep, *, num_heads):
    B, Tv, Dv = v.shape
    _, Tl, Dl = l.shape
    E = prep['wq'].shape[1]
    head_dim = E // num_heads
    cd = prep['wq'].dtype

    v = v.astype(cd)
    l = l.astype(cd)

    vspec = pl.BlockSpec((None, Tv, Dv), lambda b: (b, 0, 0))
    lspec = pl.BlockSpec((None, Tl, Dl), lambda b: (b, 0, 0))

    def whole(name):                       # full-array block, re-used every grid step
        zeros = (0,) * prep[name].ndim
        return pl.BlockSpec(prep[name].shape, lambda b: zeros)

    parallel = pltpu.CompilerParams(dimension_semantics=('parallel',))

    # ---- pass 1: per-batch logits max -> global max (stable_softmax_2d) ----
    pmax = pl.pallas_call(
        functools.partial(_logits_max_kernel, num_heads=num_heads, head_dim=head_dim),
        grid=(B,),
        in_specs=[vspec, lspec, whole('wq'), whole('bq'), whole('wk'), whole('bk')],
        out_specs=pl.BlockSpec((None, 1, 128), lambda b: (b, 0, 0)),
        out_shape=jax.ShapeDtypeStruct((B, 1, 128), jnp.float32),
        compiler_params=parallel,
    )(v, l, prep['wq'], prep['bq'], prep['wk'], prep['bk'])
    gmax = jnp.max(pmax).reshape(1, 1).astype(jnp.float32)

    # ---- pass 2: projections + bidirectional attention + output projections ----
    weight_names = ('wq', 'bq', 'wk', 'bk', 'wvv', 'bvv', 'wvl', 'bvl',
                    'wov', 'bov', 'wol', 'bol')
    in_specs = ([pl.BlockSpec(memory_space=pltpu.MemorySpace.SMEM), vspec, lspec]
                + [whole(n) for n in weight_names])
    out_v, out_l = pl.pallas_call(
        functools.partial(_bi_mha_kernel, num_heads=num_heads, head_dim=head_dim),
        grid=(B,),
        in_specs=in_specs,
        out_specs=(pl.BlockSpec((None, Tv, Dv), lambda b: (b, 0, 0)),
                   pl.BlockSpec((None, Tl, Dl), lambda b: (b, 0, 0))),
        out_shape=(jax.ShapeDtypeStruct((B, Tv, Dv), jnp.float32),
                   jax.ShapeDtypeStruct((B, Tl, Dl), jnp.float32)),
        compiler_params=parallel,
    )(gmax, v, l, *(prep[n] for n in weight_names))
    return out_v, out_l


# ------------------------- parameter init (deterministic) -----------------------

def _xavier_uniform(key, shape):
    fan_out, fan_in = shape
    a = (6.0 / (fan_in + fan_out)) ** 0.5
    return jax.random.uniform(key, shape, jnp.float32, -a, a)


def init_params(key, v_dim, l_dim, embed_dim):
    names = ['v_proj', 'l_proj', 'values_v_proj', 'values_l_proj',
             'out_v_proj', 'out_l_proj']
    shapes = [(embed_dim, v_dim), (embed_dim, l_dim), (embed_dim, v_dim),
              (embed_dim, l_dim), (v_dim, embed_dim), (l_dim, embed_dim)]
    params = {}
    for name, shape, k in zip(names, shapes, jax.random.split(key, len(names))):
        params[name + '_w'] = _xavier_uniform(k, shape)
        params[name + '_b'] = jnp.zeros((shape[0],), jnp.float32)
    return params


# ------------------------------ pure-JAX reference ------------------------------

def _reference(v, l, params, *, num_heads):
    B, Tv, Dv = v.shape
    _, Tl, Dl = l.shape
    E = params['v_proj_w'].shape[0]
    hd = E // num_heads
    scale = float(hd) ** -0.5

    def lin(x, name):
        return x @ params[name + '_w'].T + params[name + '_b']

    def shape_heads(x, T):
        return x.reshape(B, T, num_heads, hd).transpose(0, 2, 1, 3).reshape(
            B * num_heads, T, hd)

    q = shape_heads(lin(v, 'v_proj') * scale, Tv)
    k = shape_heads(lin(l, 'l_proj'), Tl)
    vv = shape_heads(lin(v, 'values_v_proj'), Tv)
    vl = shape_heads(lin(l, 'values_l_proj'), Tl)

    aw = jnp.einsum('bqd,bkd->bqk', q, k)
    aw = aw - jnp.max(aw)
    aw = jnp.clip(aw, -50000.0, 50000.0)
    aw_t = jnp.swapaxes(aw, 1, 2)
    aw_l = aw_t - jnp.max(aw_t, axis=-1, keepdims=True)
    aw_l = jnp.clip(aw_l, -50000.0, 50000.0)
    aw_l = jax.nn.softmax(aw_l, axis=-1)
    aw_v = jax.nn.softmax(aw, axis=-1)

    ov = jnp.einsum('bqk,bkd->bqd', aw_v, vl)
    ol = jnp.einsum('bkq,bqd->bkd', aw_l, vv)
    ov = ov.reshape(B, num_heads, Tv, hd).transpose(0, 2, 1, 3).reshape(B, Tv, E)
    ol = ol.reshape(B, num_heads, Tl, hd).transpose(0, 2, 1, 3).reshape(B, Tl, E)
    return lin(ov, 'out_v_proj'), lin(ol, 'out_l_proj')


if __name__ == "__main__":
    key = jax.random.PRNGKey(0)
    kv, kl, kp = jax.random.split(key, 3)

    B, Tv, Tl = 2, 16, 8
    v_dim = l_dim = embed_dim = 32
    num_heads = 4

    v = jax.random.normal(kv, (B, Tv, v_dim), jnp.float32)
    l = jax.random.normal(kl, (B, Tl, l_dim), jnp.float32)
    params = init_params(kp, v_dim, l_dim, embed_dim)
    ref_v, ref_l = _reference(v, l, params, num_heads=num_heads)

    # f32 path (strict check against the reference).
    prep32 = prepare_params(params, num_heads=num_heads, compute_dtype=jnp.float32)
    out_v, out_l = bi_multi_head_attention(v, l, prep32, num_heads=num_heads)
    jax.block_until_ready((out_v, out_l))
    assert jnp.allclose(out_v, ref_v, rtol=1e-4, atol=1e-4), "out_v mismatch (f32)"
    assert jnp.allclose(out_l, ref_l, rtol=1e-4, atol=1e-4), "out_l mismatch (f32)"

    # bf16-matmul path (v6e/v7x MXU; f32 accumulation) — looser tolerance.
    prep16 = prepare_params(params, num_heads=num_heads, compute_dtype=jnp.bfloat16)
    out_v16, out_l16 = bi_multi_head_attention(v, l, prep16, num_heads=num_heads)
    jax.block_until_ready((out_v16, out_l16))
    assert jnp.allclose(out_v16, ref_v, rtol=1e-1, atol=1e-1), "out_v mismatch (bf16)"
    assert jnp.allclose(out_l16, ref_l, rtol=1e-1, atol=1e-1), "out_l mismatch (bf16)"

    print("KERNEL_OK")
</pallas_src>

<mosaic_0001>
module attributes {stable_mosaic.version = 11 : i64} {
  func.func @_bi_mha_kernel(%arg0: i32, %arg1: memref<1x1xf32, #tpu.memory_space<smem>>, %arg2: memref<1x16x32xf32, #tpu.memory_space<vmem>>, %arg3: memref<1x8x32xf32, #tpu.memory_space<vmem>>, %arg4: memref<32x32xf32, #tpu.memory_space<vmem>>, %arg5: memref<1x32xf32, #tpu.memory_space<vmem>>, %arg6: memref<32x32xf32, #tpu.memory_space<vmem>>, %arg7: memref<1x32xf32, #tpu.memory_space<vmem>>, %arg8: memref<32x32xf32, #tpu.memory_space<vmem>>, %arg9: memref<1x32xf32, #tpu.memory_space<vmem>>, %arg10: memref<32x32xf32, #tpu.memory_space<vmem>>, %arg11: memref<1x32xf32, #tpu.memory_space<vmem>>, %arg12: memref<4x8x32xf32, #tpu.memory_space<vmem>>, %arg13: memref<1x32xf32, #tpu.memory_space<vmem>>, %arg14: memref<4x8x32xf32, #tpu.memory_space<vmem>>, %arg15: memref<1x32xf32, #tpu.memory_space<vmem>>, %arg16: memref<1x16x32xf32, #tpu.memory_space<vmem>>, %arg17: memref<1x8x32xf32, #tpu.memory_space<vmem>>) attributes {dimension_semantics = [#tpu.dimension_semantics<parallel>], iteration_bounds = array<i64: 2>, scalar_prefetch = 0 : i64, scratch_operands = 0 : i64, tpu.core_type = #tpu.core_type<tc>, window_params = [{transform_indices = @transform_0, window_bounds = array<i64: 1, 1>}, {transform_indices = @transform_1, window_bounds = array<i64: 1, 16, 32>}, {transform_indices = @transform_2, window_bounds = array<i64: 1, 8, 32>}, {pipeline_mode = #tpu.pipeline_mode<synchronous>, transform_indices = @transform_3, window_bounds = array<i64: 32, 32>}, {pipeline_mode = #tpu.pipeline_mode<synchronous>, transform_indices = @transform_4, window_bounds = array<i64: 1, 32>}, {pipeline_mode = #tpu.pipeline_mode<synchronous>, transform_indices = @transform_5, window_bounds = array<i64: 32, 32>}, {pipeline_mode = #tpu.pipeline_mode<synchronous>, transform_indices = @transform_6, window_bounds = array<i64: 1, 32>}, {pipeline_mode = #tpu.pipeline_mode<synchronous>, transform_indices = @transform_7, window_bounds = array<i64: 32, 32>}, {pipeline_mode = #tpu.pipeline_mode<synchronous>, transform_indices = @transform_8, window_bounds = array<i64: 1, 32>}, {pipeline_mode = #tpu.pipeline_mode<synchronous>, transform_indices = @transform_9, window_bounds = array<i64: 32, 32>}, {pipeline_mode = #tpu.pipeline_mode<synchronous>, transform_indices = @transform_10, window_bounds = array<i64: 1, 32>}, {pipeline_mode = #tpu.pipeline_mode<synchronous>, transform_indices = @transform_11, window_bounds = array<i64: 4, 8, 32>}, {pipeline_mode = #tpu.pipeline_mode<synchronous>, transform_indices = @transform_12, window_bounds = array<i64: 1, 32>}, {pipeline_mode = #tpu.pipeline_mode<synchronous>, transform_indices = @transform_13, window_bounds = array<i64: 4, 8, 32>}, {pipeline_mode = #tpu.pipeline_mode<synchronous>, transform_indices = @transform_14, window_bounds = array<i64: 1, 32>}, {transform_indices = @transform_15, window_bounds = array<i64: 1, 16, 32>}, {transform_indices = @transform_16, window_bounds = array<i64: 1, 8, 32>}]} {
    %c0 = arith.constant 0 : index
    %c0_0 = arith.constant 0 : index
    %c0_1 = arith.constant 0 : index
    %0 = vector.load %arg2[%c0, %c0_0, %c0_1] : memref<1x16x32xf32, #tpu.memory_space<vmem>>, vector<1x16x32xf32>
    %1 = vector.shape_cast %0 : vector<1x16x32xf32> to vector<16x32xf32>
    %c0_2 = arith.constant 0 : index
    %c0_3 = arith.constant 0 : index
    %c0_4 = arith.constant 0 : index
    %2 = vector.load %arg3[%c0_2, %c0_3, %c0_4] : memref<1x8x32xf32, #tpu.memory_space<vmem>>, vector<1x8x32xf32>
    %3 = vector.shape_cast %2 : vector<1x8x32xf32> to vector<8x32xf32>
    %c0_5 = arith.constant 0 : index
    %c0_6 = arith.constant 0 : index
    %4 = vector.load %arg4[%c0_5, %c0_6] : memref<32x32xf32, #tpu.memory_space<vmem>>, vector<32x32xf32>
    %cst = arith.constant dense<0.000000e+00> : vector<16x32xf32>
    %5 = tpu.matmul %1, %4, %cst {dimension_numbers = #tpu.dot_dimension_numbers<[1], [0], [0], [1], [0, 0, 1, 1], [], []>} : vector<16x32xf32>, vector<32x32xf32>, vector<16x32xf32> -> vector<16x32xf32>
    %c0_7 = arith.constant 0 : index
    %c0_8 = arith.constant 0 : index
    %6 = vector.load %arg5[%c0_7, %c0_8] : memref<1x32xf32, #tpu.memory_space<vmem>>, vector<1x32xf32>
    %7 = vector.broadcast %6 : vector<1x32xf32> to vector<16x32xf32>
    %8 = arith.addf %5, %7 : vector<16x32xf32>
    %9 = vector.extract_strided_slice %8 {offsets = [0, 0], sizes = [16, 8], strides = [1, 1]} : vector<16x32xf32> to vector<16x8xf32>
    %10 = vector.extract_strided_slice %8 {offsets = [0, 8], sizes = [16, 8], strides = [1, 1]} : vector<16x32xf32> to vector<16x8xf32>
    %11 = vector.extract_strided_slice %8 {offsets = [0, 16], sizes = [16, 8], strides = [1, 1]} : vector<16x32xf32> to vector<16x8xf32>
    %12 = vector.extract_strided_slice %8 {offsets = [0, 24], sizes = [16, 8], strides = [1, 1]} : vector<16x32xf32> to vector<16x8xf32>
    %13 = vector.shape_cast %9 : vector<16x8xf32> to vector<1x16x8xf32>
    %14 = vector.shape_cast %10 : vector<16x8xf32> to vector<1x16x8xf32>
    %15 = vector.shape_cast %11 : vector<16x8xf32> to vector<1x16x8xf32>
    %16 = vector.shape_cast %12 : vector<16x8xf32> to vector<1x16x8xf32>
    %17 = tpu.concatenate %13, %14, %15, %16 in 0 : vector<1x16x8xf32>, vector<1x16x8xf32>, vector<1x16x8xf32>, vector<1x16x8xf32> -> vector<4x16x8xf32>
    %c0_9 = arith.constant 0 : index
    %c0_10 = arith.constant 0 : index
    %18 = vector.load %arg6[%c0_9, %c0_10] : memref<32x32xf32, #tpu.memory_space<vmem>>, vector<32x32xf32>
    %cst_11 = arith.constant dense<0.000000e+00> : vector<8x32xf32>
    %19 = tpu.matmul %3, %18, %cst_11 {dimension_numbers = #tpu.dot_dimension_numbers<[1], [0], [0], [1], [0, 0, 1, 1], [], []>} : vector<8x32xf32>, vector<32x32xf32>, vector<8x32xf32> -> vector<8x32xf32>
    %c0_12 = arith.constant 0 : index
    %c0_13 = arith.constant 0 : index
    %20 = vector.load %arg7[%c0_12, %c0_13] : memref<1x32xf32, #tpu.memory_space<vmem>>, vector<1x32xf32>
    %21 = vector.broadcast %20 : vector<1x32xf32> to vector<8x32xf32>
    %22 = arith.addf %19, %21 : vector<8x32xf32>
    %23 = vector.extract_strided_slice %22 {offsets = [0, 0], sizes = [8, 8], strides = [1, 1]} : vector<8x32xf32> to vector<8x8xf32>
    %24 = vector.extract_strided_slice %22 {offsets = [0, 8], sizes = [8, 8], strides = [1, 1]} : vector<8x32xf32> to vector<8x8xf32>
    %25 = vector.extract_strided_slice %22 {offsets = [0, 16], sizes = [8, 8], strides = [1, 1]} : vector<8x32xf32> to vector<8x8xf32>
    %26 = vector.extract_strided_slice %22 {offsets = [0, 24], sizes = [8, 8], strides = [1, 1]} : vector<8x32xf32> to vector<8x8xf32>
    %27 = vector.shape_cast %23 : vector<8x8xf32> to vector<1x8x8xf32>
    %28 = vector.shape_cast %24 : vector<8x8xf32> to vector<1x8x8xf32>
    %29 = vector.shape_cast %25 : vector<8x8xf32> to vector<1x8x8xf32>
    %30 = vector.shape_cast %26 : vector<8x8xf32> to vector<1x8x8xf32>
    %31 = tpu.concatenate %27, %28, %29, %30 in 0 : vector<1x8x8xf32>, vector<1x8x8xf32>, vector<1x8x8xf32>, vector<1x8x8xf32> -> vector<4x8x8xf32>
    "tpu.trace_start"() <{level = 10 : i32, message = "hqd,hkd->hqk"}> : () -> ()
    %cst_14 = arith.constant dense<0.000000e+00> : vector<4x16x8xf32>
    %32 = tpu.matmul %17, %31, %cst_14 {dimension_numbers = #tpu.dot_dimension_numbers<[2], [2], [1], [1], [0, 0, 0, 1, 1, 1], [0], [0]>} : vector<4x16x8xf32>, vector<4x8x8xf32>, vector<4x16x8xf32> -> vector<4x16x8xf32>
    "tpu.trace_stop"() : () -> ()
    %c0_15 = arith.constant 0 : index
    %c0_16 = arith.constant 0 : index
    %33 = memref.load %arg1[%c0_15, %c0_16] : memref<1x1xf32, #tpu.memory_space<smem>>
    %34 = vector.broadcast %33 : f32 to vector<4x16x8xf32>
    %35 = arith.subf %32, %34 : vector<4x16x8xf32>
    %cst_17 = arith.constant -5.000000e+04 : f32
    %cst_18 = arith.constant 5.000000e+04 : f32
    %36 = vector.broadcast %cst_17 : f32 to vector<4x16x8xf32>
    %37 = arith.maximumf %36, %35 : vector<4x16x8xf32>
    %38 = vector.broadcast %cst_18 : f32 to vector<4x16x8xf32>
    %39 = arith.minimumf %38, %37 : vector<4x16x8xf32>
    %c0_19 = arith.constant 0 : index
    %c0_20 = arith.constant 0 : index
    %40 = vector.load %arg8[%c0_19, %c0_20] : memref<32x32xf32, #tpu.memory_space<vmem>>, vector<32x32xf32>
    %cst_21 = arith.constant dense<0.000000e+00> : vector<16x32xf32>
    %41 = tpu.matmul %1, %40, %cst_21 {dimension_numbers = #tpu.dot_dimension_numbers<[1], [0], [0], [1], [0, 0, 1, 1], [], []>} : vector<16x32xf32>, vector<32x32xf32>, vector<16x32xf32> -> vector<16x32xf32>
    %c0_22 = arith.constant 0 : index
    %c0_23 = arith.constant 0 : index
    %42 = vector.load %arg9[%c0_22, %c0_23] : memref<1x32xf32, #tpu.memory_space<vmem>>, vector<1x32xf32>
    %43 = vector.broadcast %42 : vector<1x32xf32> to vector<16x32xf32>
    %44 = arith.addf %41, %43 : vector<16x32xf32>
    %45 = vector.extract_strided_slice %44 {offsets = [0, 0], sizes = [16, 8], strides = [1, 1]} : vector<16x32xf32> to vector<16x8xf32>
    %46 = vector.extract_strided_slice %44 {offsets = [0, 8], sizes = [16, 8], strides = [1, 1]} : vector<16x32xf32> to vector<16x8xf32>
    %47 = vector.extract_strided_slice %44 {offsets = [0, 16], sizes = [16, 8], strides = [1, 1]} : vector<16x32xf32> to vector<16x8xf32>
    %48 = vector.extract_strided_slice %44 {offsets = [0, 24], sizes = [16, 8], strides = [1, 1]} : vector<16x32xf32> to vector<16x8xf32>
    %49 = vector.shape_cast %45 : vector<16x8xf32> to vector<1x16x8xf32>
    %50 = vector.shape_cast %46 : vector<16x8xf32> to vector<1x16x8xf32>
    %51 = vector.shape_cast %47 : vector<16x8xf32> to vector<1x16x8xf32>
    %52 = vector.shape_cast %48 : vector<16x8xf32> to vector<1x16x8xf32>
    %53 = tpu.concatenate %49, %50, %51, %52 in 0 : vector<1x16x8xf32>, vector<1x16x8xf32>, vector<1x16x8xf32>, vector<1x16x8xf32> -> vector<4x16x8xf32>
    %c0_24 = arith.constant 0 : index
    %c0_25 = arith.constant 0 : index
    %54 = vector.load %arg10[%c0_24, %c0_25] : memref<32x32xf32, #tpu.memory_space<vmem>>, vector<32x32xf32>
    %cst_26 = arith.constant dense<0.000000e+00> : vector<8x32xf32>
    %55 = tpu.matmul %3, %54, %cst_26 {dimension_numbers = #tpu.dot_dimension_numbers<[1], [0], [0], [1], [0, 0, 1, 1], [], []>} : vector<8x32xf32>, vector<32x32xf32>, vector<8x32xf32> -> vector<8x32xf32>
    %c0_27 = arith.constant 0 : index
    %c0_28 = arith.constant 0 : index
    %56 = vector.load %arg11[%c0_27, %c0_28] : memref<1x32xf32, #tpu.memory_space<vmem>>, vector<1x32xf32>
    %57 = vector.broadcast %56 : vector<1x32xf32> to vector<8x32xf32>
    %58 = arith.addf %55, %57 : vector<8x32xf32>
    %59 = vector.extract_strided_slice %58 {offsets = [0, 0], sizes = [8, 8], strides = [1, 1]} : vector<8x32xf32> to vector<8x8xf32>
    %60 = vector.extract_strided_slice %58 {offsets = [0, 8], sizes = [8, 8], strides = [1, 1]} : vector<8x32xf32> to vector<8x8xf32>
    %61 = vector.extract_strided_slice %58 {offsets = [0, 16], sizes = [8, 8], strides = [1, 1]} : vector<8x32xf32> to vector<8x8xf32>
    %62 = vector.extract_strided_slice %58 {offsets = [0, 24], sizes = [8, 8], strides = [1, 1]} : vector<8x32xf32> to vector<8x8xf32>
    %63 = vector.shape_cast %59 : vector<8x8xf32> to vector<1x8x8xf32>
    %64 = vector.shape_cast %60 : vector<8x8xf32> to vector<1x8x8xf32>
    %65 = vector.shape_cast %61 : vector<8x8xf32> to vector<1x8x8xf32>
    %66 = vector.shape_cast %62 : vector<8x8xf32> to vector<1x8x8xf32>
    %67 = tpu.concatenate %63, %64, %65, %66 in 0 : vector<1x8x8xf32>, vector<1x8x8xf32>, vector<1x8x8xf32>, vector<1x8x8xf32> -> vector<4x8x8xf32>
    %cst_29 = arith.constant dense<0xFF800000> : vector<4x16xf32>
    %68 = vector.multi_reduction <maximumf>, %39, %cst_29 [2] : vector<4x16x8xf32> to vector<4x16xf32>
    %69 = vector.shape_cast %68 : vector<4x16xf32> to vector<4x16x1xf32>
    %70 = vector.broadcast %69 : vector<4x16x1xf32> to vector<4x16x8xf32>
    %71 = arith.subf %39, %70 : vector<4x16x8xf32>
    %72 = math.exp %71 : vector<4x16x8xf32>
    %cst_30 = arith.constant dense<0.000000e+00> : vector<4x16xf32>
    %73 = vector.multi_reduction <add>, %72, %cst_30 [2] : vector<4x16x8xf32> to vector<4x16xf32>
    %74 = vector.shape_cast %73 : vector<4x16xf32> to vector<4x16x1xf32>
    %75 = tpu.reciprocal %74 : vector<4x16x1xf32> -> vector<4x16x1xf32>
    %76 = vector.broadcast %75 : vector<4x16x1xf32> to vector<4x16x8xf32>
    %77 = arith.mulf %72, %76 : vector<4x16x8xf32>
    %cst_31 = arith.constant dense<0xFF800000> : vector<4x8xf32>
    %78 = vector.multi_reduction <maximumf>, %39, %cst_31 [1] : vector<4x16x8xf32> to vector<4x8xf32>
    %79 = vector.shape_cast %78 : vector<4x8xf32> to vector<4x1x8xf32>
    %80 = vector.broadcast %79 : vector<4x1x8xf32> to vector<4x16x8xf32>
    %81 = arith.subf %39, %80 : vector<4x16x8xf32>
    %cst_32 = arith.constant -5.000000e+04 : f32
    %cst_33 = arith.constant 5.000000e+04 : f32
    %82 = vector.broadcast %cst_32 : f32 to vector<4x16x8xf32>
    %83 = arith.maximumf %82, %81 : vector<4x16x8xf32>
    %84 = vector.broadcast %cst_33 : f32 to vector<4x16x8xf32>
    %85 = arith.minimumf %84, %83 : vector<4x16x8xf32>
    %86 = math.exp %85 : vector<4x16x8xf32>
    %cst_34 = arith.constant dense<0.000000e+00> : vector<4x8xf32>
    %87 = vector.multi_reduction <add>, %86, %cst_34 [1] : vector<4x16x8xf32> to vector<4x8xf32>
    %88 = vector.shape_cast %87 : vector<4x8xf32> to vector<4x1x8xf32>
    %89 = tpu.reciprocal %88 : vector<4x1x8xf32> -> vector<4x1x8xf32>
    %90 = vector.broadcast %89 : vector<4x1x8xf32> to vector<4x16x8xf32>
    %91 = arith.mulf %86, %90 : vector<4x16x8xf32>
    "tpu.trace_start"() <{level = 10 : i32, message = "hqk,hkd->hqd"}> : () -> ()
    %cst_35 = arith.constant dense<0.000000e+00> : vector<4x16x8xf32>
    %92 = tpu.matmul %77, %67, %cst_35 {dimension_numbers = #tpu.dot_dimension_numbers<[2], [1], [1], [2], [0, 0, 0, 1, 1, 2], [0], [0]>} : vector<4x16x8xf32>, vector<4x8x8xf32>, vector<4x16x8xf32> -> vector<4x16x8xf32>
    "tpu.trace_stop"() : () -> ()
    %93 = tpu.transpose %91, [0, 2, 1] : vector<4x16x8xf32> -> vector<4x8x16xf32>
    "tpu.trace_start"() <{level = 10 : i32, message = "hkq,hqd->hkd"}> : () -> ()
    %cst_36 = arith.constant dense<0.000000e+00> : vector<4x8x8xf32>
    %94 = tpu.matmul %93, %53, %cst_36 {dimension_numbers = #tpu.dot_dimension_numbers<[2], [1], [1], [2], [0, 0, 0, 1, 1, 2], [0], [0]>} : vector<4x8x16xf32>, vector<4x16x8xf32>, vector<4x8x8xf32> -> vector<4x8x8xf32>
    "tpu.trace_stop"() : () -> ()
    %c0_37 = arith.constant 0 : index
    %c0_38 = arith.constant 0 : index
    %c0_39 = arith.constant 0 : index
    %95 = vector.load %arg12[%c0_37, %c0_38, %c0_39] : memref<4x8x32xf32, #tpu.memory_space<vmem>>, vector<4x8x32xf32>
    "tpu.trace_start"() <{level = 10 : i32, message = "hqd,hde->hqe"}> : () -> ()
    %cst_40 = arith.constant dense<0.000000e+00> : vector<4x16x32xf32>
    %96 = tpu.matmul %92, %95, %cst_40 {dimension_numbers = #tpu.dot_dimension_numbers<[2], [1], [1], [2], [0, 0, 0, 1, 1, 2], [0], [0]>} : vector<4x16x8xf32>, vector<4x8x32xf32>, vector<4x16x32xf32> -> vector<4x16x32xf32>
    "tpu.trace_stop"() : () -> ()
    %c0_41 = arith.constant 0 : index
    %c0_42 = arith.constant 0 : index
    %c0_43 = arith.constant 0 : index
    %97 = vector.load %arg14[%c0_41, %c0_42, %c0_43] : memref<4x8x32xf32, #tpu.memory_space<vmem>>, vector<4x8x32xf32>
    "tpu.trace_start"() <{level = 10 : i32, message = "hkd,hde->hke"}> : () -> ()
    %cst_44 = arith.constant dense<0.000000e+00> : vector<4x8x32xf32>
    %98 = tpu.matmul %94, %97, %cst_44 {dimension_numbers = #tpu.dot_dimension_numbers<[2], [1], [1], [2], [0, 0, 0, 1, 1, 2], [0], [0]>} : vector<4x8x8xf32>, vector<4x8x32xf32>, vector<4x8x32xf32> -> vector<4x8x32xf32>
    "tpu.trace_stop"() : () -> ()
    %cst_45 = arith.constant dense<0.000000e+00> : vector<16x32xf32>
    %99 = vector.multi_reduction <add>, %96, %cst_45 [0] : vector<4x16x32xf32> to vector<16x32xf32>
    %c0_46 = arith.constant 0 : index
    %c0_47 = arith.constant 0 : index
    %100 = vector.load %arg13[%c0_46, %c0_47] : memref<1x32xf32, #tpu.memory_space<vmem>>, vector<1x32xf32>
    %101 = vector.broadcast %100 : vector<1x32xf32> to vector<16x32xf32>
    %102 = arith.addf %99, %101 : vector<16x32xf32>
    %c0_48 = arith.constant 0 : index
    %c0_49 = arith.constant 0 : index
    %c0_50 = arith.constant 0 : index
    %103 = vector.load %arg16[%c0_48, %c0_49, %c0_50] : memref<1x16x32xf32, #tpu.memory_space<vmem>>, vector<1x16x32xf32>
    %104 = vector.shape_cast %103 : vector<1x16x32xf32> to vector<16x32xf32>
    %105 = vector.shape_cast %102 : vector<16x32xf32> to vector<1x16x32xf32>
    tpu.vector_store %arg16[%c0_48, %c0_49, %c0_50], %105 {strides = array<i32>} : memref<1x16x32xf32, #tpu.memory_space<vmem>>, vector<1x16x32xf32>,
    %cst_51 = arith.constant dense<0.000000e+00> : vector<8x32xf32>
    %106 = vector.multi_reduction <add>, %98, %cst_51 [0] : vector<4x8x32xf32> to vector<8x32xf32>
    %c0_52 = arith.constant 0 : index
    %c0_53 = arith.constant 0 : index
    %107 = vector.load %arg15[%c0_52, %c0_53] : memref<1x32xf32, #tpu.memory_space<vmem>>, vector<1x32xf32>
    %108 = vector.broadcast %107 : vector<1x32xf32> to vector<8x32xf32>
    %109 = arith.addf %106, %108 : vector<8x32xf32>
    %c0_54 = arith.constant 0 : index
    %c0_55 = arith.constant 0 : index
    %c0_56 = arith.constant 0 : index
    %110 = vector.load %arg17[%c0_54, %c0_55, %c0_56] : memref<1x8x32xf32, #tpu.memory_space<vmem>>, vector<1x8x32xf32>
    %111 = vector.shape_cast %110 : vector<1x8x32xf32> to vector<8x32xf32>
    %112 = vector.shape_cast %109 : vector<8x32xf32> to vector<1x8x32xf32>
    tpu.vector_store %arg17[%c0_54, %c0_55, %c0_56], %112 {strides = array<i32>} : memref<1x8x32xf32, #tpu.memory_space<vmem>>, vector<1x8x32xf32>,
    return
  }
  func.func @transform_0(%arg0: i32) -> (i32, i32) {
    %c0_i32 = arith.constant 0 : i32
    %c0_i32_0 = arith.constant 0 : i32
    %c0_i32_1 = arith.constant 0 : i32
    return %c0_i32, %c0_i32_0 : i32, i32
  }
  func.func @transform_1(%arg0: i32) -> (i32, i32, i32) {
    %c0_i32 = arith.constant 0 : i32
    %c0_i32_0 = arith.constant 0 : i32
    %c0_i32_1 = arith.constant 0 : i32
    return %arg0, %c0_i32, %c0_i32_0 : i32, i32, i32
  }
  func.func @transform_2(%arg0: i32) -> (i32, i32, i32) {
    %c0_i32 = arith.constant 0 : i32
    %c0_i32_0 = arith.constant 0 : i32
    %c0_i32_1 = arith.constant 0 : i32
    return %arg0, %c0_i32, %c0_i32_0 : i32, i32, i32
  }
  func.func @transform_3(%arg0: i32) -> (i32, i32) {
    %c0_i32 = arith.constant 0 : i32
    %c0_i32_0 = arith.constant 0 : i32
    %c0_i32_1 = arith.constant 0 : i32
    return %c0_i32, %c0_i32_0 : i32, i32
  }
  func.func @transform_4(%arg0: i32) -> (i32, i32) {
    %c0_i32 = arith.constant 0 : i32
    %c0_i32_0 = arith.constant 0 : i32
    %c0_i32_1 = arith.constant 0 : i32
    return %c0_i32, %c0_i32_0 : i32, i32
  }
  func.func @transform_5(%arg0: i32) -> (i32, i32) {
    %c0_i32 = arith.constant 0 : i32
    %c0_i32_0 = arith.constant 0 : i32
    %c0_i32_1 = arith.constant 0 : i32
    return %c0_i32, %c0_i32_0 : i32, i32
  }
  func.func @transform_6(%arg0: i32) -> (i32, i32) {
    %c0_i32 = arith.constant 0 : i32
    %c0_i32_0 = arith.constant 0 : i32
    %c0_i32_1 = arith.constant 0 : i32
    return %c0_i32, %c0_i32_0 : i32, i32
  }
  func.func @transform_7(%arg0: i32) -> (i32, i32) {
    %c0_i32 = arith.constant 0 : i32
    %c0_i32_0 = arith.constant 0 : i32
    %c0_i32_1 = arith.constant 0 : i32
    return %c0_i32, %c0_i32_0 : i32, i32
  }
  func.func @transform_8(%arg0: i32) -> (i32, i32) {
    %c0_i32 = arith.constant 0 : i32
    %c0_i32_0 = arith.constant 0 : i32
    %c0_i32_1 = arith.constant 0 : i32
    return %c0_i32, %c0_i32_0 : i32, i32
  }
  func.func @transform_9(%arg0: i32) -> (i32, i32) {
    %c0_i32 = arith.constant 0 : i32
    %c0_i32_0 = arith.constant 0 : i32
    %c0_i32_1 = arith.constant 0 : i32
    return %c0_i32, %c0_i32_0 : i32, i32
  }
  func.func @transform_10(%arg0: i32) -> (i32, i32) {
    %c0_i32 = arith.constant 0 : i32
    %c0_i32_0 = arith.constant 0 : i32
    %c0_i32_1 = arith.constant 0 : i32
    return %c0_i32, %c0_i32_0 : i32, i32
  }
  func.func @transform_11(%arg0: i32) -> (i32, i32, i32) {
    %c0_i32 = arith.constant 0 : i32
    %c0_i32_0 = arith.constant 0 : i32
    %c0_i32_1 = arith.constant 0 : i32
    %c0_i32_2 = arith.constant 0 : i32
    return %c0_i32, %c0_i32_0, %c0_i32_1 : i32, i32, i32
  }
  func.func @transform_12(%arg0: i32) -> (i32, i32) {
    %c0_i32 = arith.constant 0 : i32
    %c0_i32_0 = arith.constant 0 : i32
    %c0_i32_1 = arith.constant 0 : i32
    return %c0_i32, %c0_i32_0 : i32, i32
  }
  func.func @transform_13(%arg0: i32) -> (i32, i32, i32) {
    %c0_i32 = arith.constant 0 : i32
    %c0_i32_0 = arith.constant 0 : i32
    %c0_i32_1 = arith.constant 0 : i32
    %c0_i32_2 = arith.constant 0 : i32
    return %c0_i32, %c0_i32_0, %c0_i32_1 : i32, i32, i32
  }
  func.func @transform_14(%arg0: i32) -> (i32, i32) {
    %c0_i32 = arith.constant 0 : i32
    %c0_i32_0 = arith.constant 0 : i32
    %c0_i32_1 = arith.constant 0 : i32
    return %c0_i32, %c0_i32_0 : i32, i32
  }
  func.func @transform_15(%arg0: i32) -> (i32, i32, i32) {
    %c0_i32 = arith.constant 0 : i32
    %c0_i32_0 = arith.constant 0 : i32
    %c0_i32_1 = arith.constant 0 : i32
    return %arg0, %c0_i32, %c0_i32_0 : i32, i32, i32
  }
  func.func @transform_16(%arg0: i32) -> (i32, i32, i32) {
    %c0_i32 = arith.constant 0 : i32
    %c0_i32_0 = arith.constant 0 : i32
    %c0_i32_1 = arith.constant 0 : i32
    return %arg0, %c0_i32, %c0_i32_0 : i32, i32, i32
  }
}

module attributes {stable_mosaic.version = 11 : i64} {
  func.func @_logits_max_kernel(%arg0: i32, %arg1: memref<1x16x32xf32, #tpu.memory_space<vmem>>, %arg2: memref<1x8x32xf32, #tpu.memory_space<vmem>>, %arg3: memref<32x32xf32, #tpu.memory_space<vmem>>, %arg4: memref<1x32xf32, #tpu.memory_space<vmem>>, %arg5: memref<32x32xf32, #tpu.memory_space<vmem>>, %arg6: memref<1x32xf32, #tpu.memory_space<vmem>>, %arg7: memref<1x1x128xf32, #tpu.memory_space<vmem>>) attributes {dimension_semantics = [#tpu.dimension_semantics<parallel>], iteration_bounds = array<i64: 2>, scalar_prefetch = 0 : i64, scratch_operands = 0 : i64, tpu.core_type = #tpu.core_type<tc>, window_params = [{transform_indices = @transform_0, window_bounds = array<i64: 1, 16, 32>}, {transform_indices = @transform_1, window_bounds = array<i64: 1, 8, 32>}, {pipeline_mode = #tpu.pipeline_mode<synchronous>, transform_indices = @transform_2, window_bounds = array<i64: 32, 32>}, {pipeline_mode = #tpu.pipeline_mode<synchronous>, transform_indices = @transform_3, window_bounds = array<i64: 1, 32>}, {pipeline_mode = #tpu.pipeline_mode<synchronous>, transform_indices = @transform_4, window_bounds = array<i64: 32, 32>}, {pipeline_mode = #tpu.pipeline_mode<synchronous>, transform_indices = @transform_5, window_bounds = array<i64: 1, 32>}, {transform_indices = @transform_6, window_bounds = array<i64: 1, 1, 128>}]} {
    %c0 = arith.constant 0 : index
    %c0_0 = arith.constant 0 : index
    %c0_1 = arith.constant 0 : index
    %0 = vector.load %arg1[%c0, %c0_0, %c0_1] : memref<1x16x32xf32, #tpu.memory_space<vmem>>, vector<1x16x32xf32>
    %1 = vector.shape_cast %0 : vector<1x16x32xf32> to vector<16x32xf32>
    %c0_2 = arith.constant 0 : index
    %c0_3 = arith.constant 0 : index
    %c0_4 = arith.constant 0 : index
    %2 = vector.load %arg2[%c0_2, %c0_3, %c0_4] : memref<1x8x32xf32, #tpu.memory_space<vmem>>, vector<1x8x32xf32>
    %3 = vector.shape_cast %2 : vector<1x8x32xf32> to vector<8x32xf32>
    %c0_5 = arith.constant 0 : index
    %c0_6 = arith.constant 0 : index
    %4 = vector.load %arg3[%c0_5, %c0_6] : memref<32x32xf32, #tpu.memory_space<vmem>>, vector<32x32xf32>
    %cst = arith.constant dense<0.000000e+00> : vector<16x32xf32>
    %5 = tpu.matmul %1, %4, %cst {dimension_numbers = #tpu.dot_dimension_numbers<[1], [0], [0], [1], [0, 0, 1, 1], [], []>} : vector<16x32xf32>, vector<32x32xf32>, vector<16x32xf32> -> vector<16x32xf32>
    %c0_7 = arith.constant 0 : index
    %c0_8 = arith.constant 0 : index
    %6 = vector.load %arg4[%c0_7, %c0_8] : memref<1x32xf32, #tpu.memory_space<vmem>>, vector<1x32xf32>
    %7 = vector.broadcast %6 : vector<1x32xf32> to vector<16x32xf32>
    %8 = arith.addf %5, %7 : vector<16x32xf32>
    %9 = vector.extract_strided_slice %8 {offsets = [0, 0], sizes = [16, 8], strides = [1, 1]} : vector<16x32xf32> to vector<16x8xf32>
    %10 = vector.extract_strided_slice %8 {offsets = [0, 8], sizes = [16, 8], strides = [1, 1]} : vector<16x32xf32> to vector<16x8xf32>
    %11 = vector.extract_strided_slice %8 {offsets = [0, 16], sizes = [16, 8], strides = [1, 1]} : vector<16x32xf32> to vector<16x8xf32>
    %12 = vector.extract_strided_slice %8 {offsets = [0, 24], sizes = [16, 8], strides = [1, 1]} : vector<16x32xf32> to vector<16x8xf32>
    %13 = vector.shape_cast %9 : vector<16x8xf32> to vector<1x16x8xf32>
    %14 = vector.shape_cast %10 : vector<16x8xf32> to vector<1x16x8xf32>
    %15 = vector.shape_cast %11 : vector<16x8xf32> to vector<1x16x8xf32>
    %16 = vector.shape_cast %12 : vector<16x8xf32> to vector<1x16x8xf32>
    %17 = tpu.concatenate %13, %14, %15, %16 in 0 : vector<1x16x8xf32>, vector<1x16x8xf32>, vector<1x16x8xf32>, vector<1x16x8xf32> -> vector<4x16x8xf32>
    %c0_9 = arith.constant 0 : index
    %c0_10 = arith.constant 0 : index
    %18 = vector.load %arg5[%c0_9, %c0_10] : memref<32x32xf32, #tpu.memory_space<vmem>>, vector<32x32xf32>
    %cst_11 = arith.constant dense<0.000000e+00> : vector<8x32xf32>
    %19 = tpu.matmul %3, %18, %cst_11 {dimension_numbers = #tpu.dot_dimension_numbers<[1], [0], [0], [1], [0, 0, 1, 1], [], []>} : vector<8x32xf32>, vector<32x32xf32>, vector<8x32xf32> -> vector<8x32xf32>
    %c0_12 = arith.constant 0 : index
    %c0_13 = arith.constant 0 : index
    %20 = vector.load %arg6[%c0_12, %c0_13] : memref<1x32xf32, #tpu.memory_space<vmem>>, vector<1x32xf32>
    %21 = vector.broadcast %20 : vector<1x32xf32> to vector<8x32xf32>
    %22 = arith.addf %19, %21 : vector<8x32xf32>
    %23 = vector.extract_strided_slice %22 {offsets = [0, 0], sizes = [8, 8], strides = [1, 1]} : vector<8x32xf32> to vector<8x8xf32>
    %24 = vector.extract_strided_slice %22 {offsets = [0, 8], sizes = [8, 8], strides = [1, 1]} : vector<8x32xf32> to vector<8x8xf32>
    %25 = vector.extract_strided_slice %22 {offsets = [0, 16], sizes = [8, 8], strides = [1, 1]} : vector<8x32xf32> to vector<8x8xf32>
    %26 = vector.extract_strided_slice %22 {offsets = [0, 24], sizes = [8, 8], strides = [1, 1]} : vector<8x32xf32> to vector<8x8xf32>
    %27 = vector.shape_cast %23 : vector<8x8xf32> to vector<1x8x8xf32>
    %28 = vector.shape_cast %24 : vector<8x8xf32> to vector<1x8x8xf32>
    %29 = vector.shape_cast %25 : vector<8x8xf32> to vector<1x8x8xf32>
    %30 = vector.shape_cast %26 : vector<8x8xf32> to vector<1x8x8xf32>
    %31 = tpu.concatenate %27, %28, %29, %30 in 0 : vector<1x8x8xf32>, vector<1x8x8xf32>, vector<1x8x8xf32>, vector<1x8x8xf32> -> vector<4x8x8xf32>
    "tpu.trace_start"() <{level = 10 : i32, message = "hqd,hkd->hqk"}> : () -> ()
    %cst_14 = arith.constant dense<0.000000e+00> : vector<4x16x8xf32>
    %32 = tpu.matmul %17, %31, %cst_14 {dimension_numbers = #tpu.dot_dimension_numbers<[2], [2], [1], [1], [0, 0, 0, 1, 1, 1], [0], [0]>} : vector<4x16x8xf32>, vector<4x8x8xf32>, vector<4x16x8xf32> -> vector<4x16x8xf32>
    "tpu.trace_stop"() : () -> ()
    %33 = vector.shape_cast %32 : vector<4x16x8xf32> to vector<1x4x16x8xf32>
    %cst_15 = arith.constant dense<0xFF800000> : vector<1xf32>
    %34 = vector.multi_reduction <maximumf>, %33, %cst_15 [1, 2, 3] : vector<1x4x16x8xf32> to vector<1xf32>
    %35 = vector.shape_cast %34 : vector<1xf32> to vector<1x1x1x1xf32>
    %36 = vector.extract %35[0, 0, 0, 0] : f32 from vector<1x1x1x1xf32>
    %37 = vector.broadcast %36 : f32 to vector<1x128xf32>
    %c0_16 = arith.constant 0 : index
    %c0_17 = arith.constant 0 : index
    %c0_18 = arith.constant 0 : index
    %38 = vector.load %arg7[%c0_16, %c0_17, %c0_18] : memref<1x1x128xf32, #tpu.memory_space<vmem>>, vector<1x1x128xf32>
    %39 = vector.shape_cast %38 : vector<1x1x128xf32> to vector<1x128xf32>
    %40 = vector.shape_cast %37 : vector<1x128xf32> to vector<1x1x128xf32>
    tpu.vector_store %arg7[%c0_16, %c0_17, %c0_18], %40 {strides = array<i32>} : memref<1x1x128xf32, #tpu.memory_space<vmem>>, vector<1x1x128xf32>,
    return
  }
  func.func @transform_0(%arg0: i32) -> (i32, i32, i32) {
    %c0_i32 = arith.constant 0 : i32
    %c0_i32_0 = arith.constant 0 : i32
    %c0_i32_1 = arith.constant 0 : i32
    return %arg0, %c0_i32, %c0_i32_0 : i32, i32, i32
  }
  func.func @transform_1(%arg0: i32) -> (i32, i32, i32) {
    %c0_i32 = arith.constant 0 : i32
    %c0_i32_0 = arith.constant 0 : i32
    %c0_i32_1 = arith.constant 0 : i32
    return %arg0, %c0_i32, %c0_i32_0 : i32, i32, i32
  }
  func.func @transform_2(%arg0: i32) -> (i32, i32) {
    %c0_i32 = arith.constant 0 : i32
    %c0_i32_0 = arith.constant 0 : i32
    %c0_i32_1 = arith.constant 0 : i32
    return %c0_i32, %c0_i32_0 : i32, i32
  }
  func.func @transform_3(%arg0: i32) -> (i32, i32) {
    %c0_i32 = arith.constant 0 : i32
    %c0_i32_0 = arith.constant 0 : i32
    %c0_i32_1 = arith.constant 0 : i32
    return %c0_i32, %c0_i32_0 : i32, i32
  }
  func.func @transform_4(%arg0: i32) -> (i32, i32) {
    %c0_i32 = arith.constant 0 : i32
    %c0_i32_0 = arith.constant 0 : i32
    %c0_i32_1 = arith.constant 0 : i32
    return %c0_i32, %c0_i32_0 : i32, i32
  }
  func.func @transform_5(%arg0: i32) -> (i32, i32) {
    %c0_i32 = arith.constant 0 : i32
    %c0_i32_0 = arith.constant 0 : i32
    %c0_i32_1 = arith.constant 0 : i32
    return %c0_i32, %c0_i32_0 : i32, i32
  }
  func.func @transform_6(%arg0: i32) -> (i32, i32, i32) {
    %c0_i32 = arith.constant 0 : i32
    %c0_i32_0 = arith.constant 0 : i32
    %c0_i32_1 = arith.constant 0 : i32
    return %arg0, %c0_i32, %c0_i32_0 : i32, i32, i32
  }
}

</mosaic_0001>

<bundles_post_ra>
// kernel: bi_multi_head_attention.2
= control target key start
LH: loop header
LB: loop body
LE: loop exit
PB: predicated region body
PF: predicated region fallthrough
CT: control target
= control target key end

     0   :  { %11 = vsyncpa [#allocation3], 0  ;;  %s1543_s0 = inlined_call_operand.hbm [shape: f32[2,16,32], index: 0, kind: input, shape index: {}]   ;;  %s1544_s1 = inlined_call_operand.vmem [shape: f32[2,8,32], index: 1, kind: input, shape index: {}]   ;;  %s1545_s2 = inlined_call_operand.vmem [shape: f32[32,32], index: 2, kind: input, shape index: {}]   ;;  %s1546_s3 = inlined_call_operand.vmem [shape: f32[1,32], index: 3, kind: input, shape index: {}]   ;;  %s1547_s4 = inlined_call_operand.hbm [shape: f32[32,32], index: 4, kind: input, shape index: {}]   ;;  %s1548_s5 = inlined_call_operand.hbm [shape: f32[1,32], index: 5, kind: input, shape index: {}]   ;;  %s1549_s6 = inlined_call_operand.vmem [shape: f32[2,1,128], index: 6, kind: output, shape index: {}]  }
   0x1   :  { %13 = vsyncpa [#allocation3 + $0x1], 0 }
   0x2   :  { %14 = vsyncpa [#allocation5], 0  ;;  %s1308_s21 = smov 0   ;;  %s1310_s22 = smov 0  }
   0x3   :  { %s1312_s23 = smov 0   ;;  %s1314_s24 = smov 0  }
   0x4 LB: > { %s1327_s25 = sadd.s32 4294967295, %s1260_s24   ;;  %p40_p0 = scmp.ne.s32.totalorder %s1252_s22, %s1248_s21  ;;  %s1260_s24 = sphi %s1314_s24, %s1565_s24   ;;  %s1256_s23 = sphi %s1312_s23, %s1564_s23   ;;  %s1252_s22 = sphi %s1310_s22, %s1563_s22   ;;  %s1248_s21 = sphi %s1308_s21, %s1562_s21  }
   0x5   : > { %p1550_p1 = scmp.eq.s32.totalorder %s1327_s25, 0  ;;  %p955_p2 = scmp.ge.s32.totalorder %s1260_s24, 1 }
   0x6   : > { %p187_p3 = scmp.lt.s32.totalorder %s1260_s24, 3  ;;  %s1262_s28 = smov [#allocation4]  }
   0x7   : > { %p1335_p4 = por %p1550_p1, %p40_p0  ;;  %s205_s29 = sshll.u32 %s1262_s28, 4  ;;  %s206_s29 = int_to_ptr.vmem [resolvable:$true] %s205_s29 }
   0x8   : > { %p1339_p5 = pnand %p955_p2, %p187_p3  ;;  %s1263_s7 = smov [#allocation6]  }
   0x9   : > { %s1553_s26 = scalar_select %p1335_p4, 1, 0 }
   0xa   : > { %s1554_s27 = scalar_select %p1339_p5, 1, 0 }
   0xb   : > { %p1078_p6 = pneg %p1339_p5  ;;  %s219_s8 = sshll.u32 %s1263_s7, 4  ;;  %s1351_s8 = int_to_ptr.vmem [resolvable:$true] %s219_s8 }
   0xc   : > { %s1136_s11 = scalar_lea.hbm %s1547_s4, 512 }
   0xd   : > { %p1347_p7 = pnand %p1078_p6, %p1550_p1  ;;  %p1137_p8 = scmp.ne.s32.totalorder %s1547_s4, %s1136_s11 }
   0xe   : > { %p1143_p12 = scmp.lt.u32.totalorder %s1136_s11, %s1547_s4 }
   0xf   : > { %p1138_p9 = pneg %p1347_p7 }
  0x11   : > { %p1139_p10 = pnand %p1138_p9, %p1137_p8 }
  0x13   : > { %p1140_p11 = pneg %p1139_p10 }
  0x15   : > { %p1145_p13 = pnand %p1143_p12, %p1140_p11 }
  0x17   : > { %1148 = shalt.err (!%p1145_p13)
}
  0x18   : > { %s1149_s16 = scalar_lea.vmem %s206_s29, 512  ;;  %p1157_p6 = scmp.lt.s32.totalorder %s206_s29, %s206_s29 }
  0x19   : > { %p1150_p0 = scmp.ne.s32.totalorder %s206_s29, %s1149_s16  ;;  %p1158_p1 = scmp.lt.s32.totalorder %s1149_s16, %s1149_s16 }
  0x1b   : > { %p1152_p2 = pnand %p1150_p0, %p1138_p9  ;;  %p1159_p4 = por %p1158_p1, %p1157_p6 }
  0x1d   : > { %p1153_p3 = pneg %p1152_p2 }
  0x1f   : > { %p1160_p5 = pnand %p1159_p4, %p1153_p3 }
  0x21   : > { %1163 = shalt.err (!%p1160_p5)
}
  0x22   : > { %s1264_s17 = smov 128   ;;  %s1265_s18 = smov 8  }
  0x23   : > { %1081 = dma.hbm_to_vmem [thread:$0]  (!%p1347_p7), %s1547_s4, 512, %s206_s29, [#allocation5], %s1264_s17, %s1264_s17, %s1265_s18  }
  0x24   : > { %s1164_s7 = scalar_lea.hbm %s1548_s5, 16 }
  0x25   : > { %p1165_p1 = scmp.ne.s32.totalorder %s1548_s5, %s1164_s7  ;;  %p1171_p8 = scmp.lt.u32.totalorder %s1164_s7, %s1548_s5 }
  0x27   : > { %p1167_p4 = pnand %p1165_p1, %p1138_p9 }
  0x29   : > { %p1168_p5 = pneg %p1167_p4 }
  0x2b   : > { %p1173_p10 = pnand %p1171_p8, %p1168_p5 }
  0x2d   : > { %1176 = shalt.err (!%p1173_p10)
}
  0x2e   : > { %s1177_s29 = scalar_lea.vmem %s1351_s8, 16  ;;  %s1184_s13 = scalar_lea.vmem %s1351_s8, 32 }
  0x2f   : > { %p1178_p11 = scmp.ne.s32.totalorder %s1351_s8, %s1177_s29  ;;  %p1185_p0 = scmp.lt.s32.totalorder %s1351_s8, %s1351_s8 }
  0x30   : > { %p1186_p2 = scmp.lt.s32.totalorder %s1184_s13, %s1177_s29 }
  0x31   : > { %p1180_p12 = pnand %p1178_p11, %p1138_p9 }
  0x32   : > { %p1187_p3 = por %p1186_p2, %p1185_p0 }
  0x33   : > { %p1181_p13 = pneg %p1180_p12 }
  0x35   : > { %p1188_p6 = pnand %p1187_p3, %p1181_p13 }
  0x37   : > { %1191 = shalt.err (!%p1188_p6)
}
  0x38   : > { %1084 = dma.hbm_to_vmem [thread:$0]  (!%p1347_p7), %s1548_s5, 16, %s1351_s8, [#allocation5]  }
  0x39   : > { %s1405_s16 = sadd.s32 1, %s1260_s24   ;;  %s27_s19 = sadd.s32 1, %s1256_s23 }
  0x3a   : > { %s24_s30 = ssub.s32 %s1260_s24, %s1405_s16  ;;  %p34_p9 = scmp.ne.s32.totalorder %s1256_s23, %s1252_s22 }
  0x3b   : > { %p25_p1 = scmp.eq.s32.totalorder %s24_s30, 0  ;;  %p35_p4 = scmp.eq.s32.totalorder %s1260_s24, 0 }
  0x3c   : > { %p1091_p5 = scmp.lt.s32.totalorder %s1260_s24, 2  ;;  %s230_s20 = sand.u32 1, %s1256_s23  }
  0x3d   : > { %s1416_s21 = scalar_select %p25_p1, %s1256_s23, %s27_s19  }
  0x3e   : > { %p36_p8 = por %p35_p4, %p34_p9  ;;  %s959_s28 = sshll.u32 %s230_s20, 4 }
  0x3f   : > { %s986_s7 = sshll.u32 %s1260_s24, 8  ;;  %s234_s8 = scalar_lea.vmem [#allocation2], %s959_s28 }
  0x40   : > { %s1422_s11 = scalar_lea.hbm %s1543_s0, %s986_s7  ;;  %s241_s12 = sshll.u32 %s234_s8, 4  ;;  %s1428_s12 = int_to_ptr.vmem [resolvable:$true] %s241_s12 }
  0x41   : > { %p1424_p7 = pnand %p1091_p5, %p36_p8  ;;  %s1430_s24 = scalar_lea.sflag [#allocation3], %s230_s20 }
  0x42   : > { %s1192_s13 = scalar_lea.hbm %s1422_s11, 256  ;;  %s1197_s19 = scalar_lea.hbm %s1543_s0, 512 }
  0x43   : > { %p1193_p10 = scmp.ne.s32.totalorder %s1422_s11, %s1192_s13  ;;  %p1194_p11 = pneg %p1424_p7 }
  0x44   : > { %p1198_p0 = scmp.lt.u32.totalorder %s1422_s11, %s1543_s0  ;;  %p1199_p2 = scmp.lt.u32.totalorder %s1197_s19, %s1192_s13 }
  0x45   : > { %p1195_p12 = pnand %p1194_p11, %p1193_p10  ;;  %p1201_p6 = scmp.lt.u32.totalorder %s1192_s13, %s1422_s11 }
  0x46   : > { %p1200_p3 = por %p1199_p2, %p1198_p0 }
  0x47   : > { %p1196_p13 = pneg %p1195_p12 }
  0x48   : > { %p1202_p9 = por %p1201_p6, %p1200_p3 }
  0x4a   : > { %p1203_p1 = pnand %p1202_p9, %p1196_p13 }
  0x4c   : > { %1206 = shalt.err (!%p1203_p1)
}
  0x4d   : > { %s1207_s20 = scalar_lea.vmem %s1428_s12, 256  ;;  %s1266_s7 = smov [#allocation2]  }
  0x4e   : > { %p1208_p4 = scmp.ne.s32.totalorder %s1428_s12, %s1207_s20  ;;  %s1212_s9 = sshll.u32 %s1266_s7, 4  ;;  %s1213_s9 = int_to_ptr.vmem [resolvable:$false] %s1212_s9 }
  0x4f   : > { %s1214_s10 = scalar_lea.vmem %s1213_s9, 512  ;;  %p1215_p10 = scmp.lt.s32.totalorder %s1428_s12, %s1213_s9 }
  0x50   : > { %p1210_p5 = pnand %p1208_p4, %p1194_p11  ;;  %p1216_p12 = scmp.lt.s32.totalorder %s1214_s10, %s1207_s20 }
  0x52   : > { %p1211_p8 = pneg %p1210_p5  ;;  %p1217_p0 = por %p1216_p12, %p1215_p10 }
  0x54   : > { %p1218_p2 = pnand %p1217_p0, %p1211_p8 }
  0x56   : > { %1221 = shalt.err (!%p1218_p2)
}
  0x57   : > { %1088 = dma.hbm_to_vmem [thread:$0]  (!%p1424_p7), %s1422_s11, 256, %s1428_s12, %s1430_s24, %s1264_s17, %s1264_s17, %s1265_s18  }
  0x58   : > { %p1557_p11 = scmp.ne.s32.totalorder %s1554_s27, 0 }
  0x59   : > { %s262_s8 = sand.u32 (!%p1557_p11), 1, %s1252_s22   ;;  %p1558_p13 = scmp.ne.s32.totalorder (!%p1557_p11), %s1553_s26, 0 }
  0x5a   : > { %260 = sbr.rel (%p1557_p11) target bundleno = 882 (0x372), region = 44  ;;  %s1464_s13 = sshll.u32 (!%p1557_p11), %s262_s8, 4 }
  0x5b   : > { %s263_s14 = scalar_lea.sflag (!%p1557_p11), [#allocation3], %s262_s8  ;;  %s266_s15 = scalar_lea.vmem (!%p1557_p11), [#allocation2], %s1464_s13 }
  0x61   : > { %1239 = dma.done.wait (%p1558_p13), %s263_s14, 256  }
  0x62   : > { %1241 = vsyncadd (%p1558_p13), %s263_s14, 4294967040  ;;  %p1559_p3 = scmp.eq.s32.totalorder %s1327_s25, 0 }
  0x64   : > { %1243 = dma.done.wait (%p1559_p3), [#allocation5], 528   ;;  %p1560_p7 = pmov %p1559_p3 }
  0x65   : > { %p305_p6 = scmp.lt.s32.totalorder %s1327_s25, 1  ;;  %v1267_v0 = vmov 0.0|0.0   ;;  %vm1268_vm0 = vmmov 0   ;;  %v1269_v1 = vmov 0.0   ;;  %v422_v2 = vld [vmem:[#allocation4] sm:$0xff]  ;;  %v423_v3 = vld [vmem:[#allocation4 + $0x8] sm:$0xff] }
  0x66   : > { %1245 = vsyncadd (%p1560_p7), [#allocation5], 4294966768  ;;  %1060 = vmatprep.subr.bf16.mxu1 %v1267_v0  ;;  %1029 = vmatprep.mubr.msk.f32.mxu1 %vm1268_vm0, %v1269_v1  ;;  %v315_v4 = vld [vmem:[%s1545_s2] sm:$0xff]  ;;  %v1061_v5 = vpack.c.bf16 %v423_v3, %v422_v2  ;;  %v316_v6 = vld [vmem:[%s1545_s2 + $0x8] sm:$0xff]  ;;  %vm326_vm1 = vcmask 261120   ;;  %vm513_vm2 = vcmask 64512  }
  0x67   : > { %s1567_s25 = smov (!%p305_p6, %s1327_s25), 1  ;;  %v424_v7 = vld [vmem:[#allocation4 + $0x10] sm:$0xff]  ;;  %v425_v8 = vld [vmem:[#allocation4 + $0x18] sm:$0xff]  ;;  %v1052_v9 = vpack.c.bf16 %v316_v6, %v315_v4  ;;  %v970_v17 = vld [vmem:[#allocation6] ss:$0 sm:$0xff]  ;;  %s1270_s10 = smov 112  }
  0x68   : > { %s966_s11 = sshll.u32 %s1567_s25, 3  ;;  %v317_v10 = vld [vmem:[%s1545_s2 + $0x10] sm:$0xff]  ;;  %v318_v11 = vld [vmem:[%s1545_s2 + $0x18] sm:$0xff]  ;;  %1062 = vmatpush3.bf16.msra.mxu1 %v1061_v5  ;;  %v1064_v12 = vpack.c.bf16 %v425_v8, %v424_v7  ;;  %v967_v19 = vld [vmem:[%s1546_s3] ss:$0 sm:$0xff]  ;;  %s1271_s8 = smov 120  }
  0x69   : > { %v1056_v13 = vpack.c.bf16 %v318_v11, %v317_v10  ;;  %v312_v14 = vld [vmem:[%s266_s15] sm:$0xff]  ;;  %1053 = vmatprep.subr.bf16.mxu0 %v1052_v9  ;;  %1063 = vmatprep.subr.bf16.mxu1 %v1267_v0  ;;  %s308_s20 = scalar_lea.vmem %s1544_s1, %s966_s11  ;;  %v313_v16 = vld [vmem:[%s266_s15 + $0x8] sm:$0xff]  ;;  %s1272_s13 = smov 104  }
  0x6a   : > { %1055 = vmatpush3.bf16.msra.mxu0 %v1052_v9  ;;  %1018 = vmatprep.mubr.msk.f32.mxu0 %vm326_vm1, %v312_v14  ;;  %v314_v15 = vld [vmem:[%s308_s20] sm:$0xff]  ;;  %s311_s26 = scalar_lea.vmem %s1549_s6, %s1567_s25 }
  0x6b   : > { %1057 = vmatprep.subr.bf16.mxu0 %v1056_v13 }
  0x6c   : > { %1065 = vmatpush3.bf16.msra.mxu1 %v1064_v12 }
  0x6e   : > { %1059 = vmatpush3.bf16.msra.mxu0 %v1056_v13 }
  0x6f   : > { %1030 = vmatmul.mubr.msk.f32.vlgmr.msra.gmra.mrb[0].mxu1 %vm326_vm1, %v314_v15 }
  0x71   : > { %1019 = vmatmul.mubr.msk.f32.vlgmr.msra.gmra.mrb[0].mxu0 %vm326_vm1, %v313_v16 }
 0x142   : > { %v502_v18 = vpop.f32.mrb[0].mxu1 }
 0x143   : > { %v503_v20 = vadd.f32 %v970_v17, %v502_v18  ;;  %v1031_v21 = vpop.f32.mrb[1].mxu1 }
 0x144   : > { %v1020_v22 = vpop.f32.mrb[0].mxu0 }
 0x145   : > { %509 = vrot.lane.b32.xlu1 %v503_v20, %s1270_s10  ;;  %507 = vrot.lane.b32.xlu0 %v503_v20, %s1271_s8  ;;  %v405_v23 = vadd.f32 %v1020_v22, %v967_v19  ;;  %v399_v24 = vpop.f32.mrb[1].mxu0 }
 0x146   : > { %1032 = vmatprep.subr.msk.mxu0 %vm513_vm2, %v503_v20  ;;  %v400_v25 = vadd.f32 %v967_v19, %v399_v24 }
 0x147   : > { %1033 = vmatpush3.xpose.msk.msra.mxu0 %vm513_vm2, %v503_v20 }
 0x148   : > { %1034 = vmatprep.mubr.msk.f32.mxu0 %vm513_vm2, %v400_v25 }
 0x149   : > { %511 = vrot.lane.b32.xlu0 %v503_v20, %s1272_s13  ;;  %412 = vrot.lane.b32.xlu1 %v405_v23, %s1271_s8 }
 0x14a   : > { %1035 = vmatmul.mubr.msk.f32.vlgmr.msra.gmra.mrb[2].mxu0 %vm513_vm2, %v405_v23 }
 0x14d   : > { %414 = vrot.lane.b32.xlu1 %v400_v25, %s1270_s10  ;;  %410 = vrot.lane.b32.xlu0 %v400_v25, %s1271_s8 }
 0x151   : > { %416 = vrot.lane.b32.xlu1 %v405_v23, %s1270_s10  ;;  %418 = vrot.lane.b32.xlu0 %v400_v25, %s1272_s13 }
 0x155   : > { %420 = vrot.lane.b32.xlu0 %v405_v23, %s1272_s13 }
 0x1b7   : > { %v510_v26 = vpop.permute.xlu1 %509  ;;  %v508_v27 = vpop.permute.xlu0 %507 }
 0x1b8   : > { %1037 = vmatprep.subr.msk.mxu1 %vm513_vm2, %v508_v27  ;;  %1042 = vmatprep.subr.msk.mxu0 %vm513_vm2, %v510_v26 }
 0x1b9   : > { %1038 = vmatpush3.xpose.msk.msra.mxu1 %vm513_vm2, %v508_v27  ;;  %1043 = vmatpush3.xpose.msk.msra.mxu0 %vm513_vm2, %v510_v26 }
 0x1bb   : > { %v512_v28 = vpop.permute.xlu0 %511  ;;  %v413_v29 = vpop.permute.xlu1 %412 }
 0x1bc   : > { %1047 = vmatprep.subr.msk.mxu1 %vm513_vm2, %v512_v28 }
 0x1bf   : > { %v415_v30 = vpop.permute.xlu1 %414  ;;  %v411_v31 = vpop.permute.xlu0 %410 }
 0x1c0   : > { %1039 = vmatprep.mubr.msk.f32.mxu1 %vm513_vm2, %v411_v31  ;;  %1044 = vmatprep.mubr.msk.f32.mxu0 %vm513_vm2, %v415_v30 }
 0x1c1   : > { %1040 = vmatmul.mubr.msk.f32.vlgmr.msra.gmra.mrb[2].mxu1 %vm513_vm2, %v413_v29 }
 0x1c2   : > { %1048 = vmatpush3.xpose.msk.msra.mxu1 %vm513_vm2, %v512_v28 }
 0x1c3   : > { %v417_v32 = vpop.permute.xlu1 %416  ;;  %v419_v33 = vpop.permute.xlu0 %418 }
 0x1c4   : > { %1045 = vmatmul.mubr.msk.f32.vlgmr.msra.gmra.mrb[4].mxu0 %vm513_vm2, %v417_v32  ;;  %1049 = vmatprep.mubr.msk.f32.mxu1 %vm513_vm2, %v419_v33 }
 0x1c7   : > { %v421_v34 = vpop.permute.xlu0 %420 }
 0x1c8   : > { %1050 = vmatmul.mubr.msk.f32.vlgmr.msra.gmra.mrb[4].mxu1 %vm513_vm2, %v421_v34 }
 0x21d   : > { %v1036_v35 = vpop.f32.mrb[2].mxu0 }
 0x21e   : > { %v586_v36 = vpop.f32.mrb[3].mxu0  ;;  %v839_v40 = vsel %vm513_vm2, %v1036_v35, -inf }
 0x21f   : > { %v838_v43 = vsel %vm513_vm2, %v586_v36, -inf }
 0x294   : > { %v1041_v37 = vpop.f32.mrb[2].mxu1 }
 0x295   : > { %v667_v38 = vpop.f32.mrb[3].mxu1  ;;  %v841_v48 = vsel %vm513_vm2, %v1041_v37, -inf }
 0x296   : > { %v840_v52 = vsel %vm513_vm2, %v667_v38, -inf }
 0x297   : > { %v1046_v39 = vpop.f32.mrb[4].mxu0 }
 0x298   : > { %v844_v41 = vsel %vm513_vm2, %v1046_v39, -inf  ;;  %v748_v42 = vpop.f32.mrb[5].mxu0 }
 0x299   : > { %v845_v44 = vmax.f32 %v839_v40, %v844_v41  ;;  %v842_v45 = vsel %vm513_vm2, %v748_v42, -inf }
 0x29a   : > { %v843_v46 = vmax.f32 %v838_v43, %v842_v45 }
 0x29b   : > { %v1051_v47 = vpop.f32.mrb[4].mxu1 }
 0x29c   : > { %v848_v49 = vsel %vm513_vm2, %v1051_v47, -inf  ;;  %v829_v50 = vpop.f32.mrb[5].mxu1  ;;  %v850_v51 = vmax.f32 %v843_v46, %v845_v44 }
 0x29d   : > { %v849_v53 = vmax.f32 %v841_v48, %v848_v49  ;;  %v846_v54 = vsel %vm513_vm2, %v829_v50, -inf }
 0x29e   : > { %v847_v55 = vmax.f32 %v840_v52, %v846_v54 }
 0x2a0   : > { %v851_v56 = vmax.f32 %v847_v55, %v849_v53 }
 0x2a2   : > { %v852_v57 = vmax.f32 %v850_v51, %v851_v56 }
 0x2a4   : > { %853 = vmax.xlane.f32.xlu1 %v852_v57 }
 0x331   : > { %v854_v58 = vpop.xlane.xlu1 %853 }
 0x332   : > { %v855_v59 = vrot.slane %v854_v58, 4 }
 0x334   : > { %v856_v60 = vmax.f32 %v854_v58, %v855_v59 }
 0x336   : > { %v857_v61 = vrot.slane %v856_v60, 2 }
 0x338   : > { %v858_v62 = vmax.f32 %v856_v60, %v857_v61 }
 0x33a   : > { %v859_v63 = vrot.slane %v858_v62, 1 }
 0x33c   : > { %v860_v0 = vmax.f32 %v858_v62, %v859_v63 }
 0x33e   : > { %1066 = vpush %v860_v0 }
 0x36f   : > { %s1067_s27 = spop %1066 }
 0x370   : > { %v862_v1 = vstv %s1067_s27 }
 0x371   : > { %863 = vst [vmem:[%s311_s26] sm:$0x1] %v862_v1 }
 0x372 PF: > { %s1561_s17 = smov %s1416_s21  ;;  %p17_p9 = scmp.ge.s32.totalorder %s1405_s16, 4  }
 0x373   : > { %s1562_s21 = smov %s1252_s22  ;;  %s1563_s22 = smov %s1256_s23 }
 0x374   : > { %s1564_s23 = smov %s1561_s17  ;;  %s1565_s24 = smov %s1405_s16 }
 0x375   :  { %19 = sbr.rel (!%p17_p9) target bundleno = 4 (0x4), region = 95 }
 0x37c   :  { %881 = vsyncpa [#allocation3], 1 }
 0x37d   :  { %883 = vsyncpa [#allocation3 + $0x1], 1 }
 0x37e   :  { %884 = vsyncpa [#allocation5], 1 }

// kernel: bi_multi_head_attention.3
= control target key start
LH: loop header
LB: loop body
LE: loop exit
PB: predicated region body
PF: predicated region fallthrough
CT: control target
= control target key end

     0   :  { %s4497_s0 = inlined_call_operand.<no memory space> [shape: f32[1,1], index: 0, kind: input, shape index: {}]   ;;  %s4498_s1 = inlined_call_operand.vmem [shape: f32[2,16,32], index: 1, kind: input, shape index: {}]   ;;  %s4499_s2 = inlined_call_operand.vmem [shape: f32[2,8,32], index: 2, kind: input, shape index: {}]   ;;  %s4500_s3 = inlined_call_operand.vmem [shape: f32[32,32], index: 3, kind: input, shape index: {}]   ;;  %s4501_s4 = inlined_call_operand.vmem [shape: f32[1,32], index: 4, kind: input, shape index: {}]   ;;  %s4502_s5 = inlined_call_operand.vmem [shape: f32[32,32], index: 5, kind: input, shape index: {}]   ;;  %s4503_s6 = inlined_call_operand.vmem [shape: f32[1,32], index: 6, kind: input, shape index: {}]   ;;  %s4504_s7 = inlined_call_operand.vmem [shape: f32[32,32], index: 7, kind: input, shape index: {}]   ;;  %s4505_s8 = inlined_call_operand.vmem [shape: f32[1,32], index: 8, kind: input, shape index: {}]   ;;  %s4506_s9 = inlined_call_operand.hbm [shape: f32[32,32], index: 9, kind: input, shape index: {}]   ;;  %s4507_s10 = inlined_call_operand.vmem [shape: f32[1,32], index: 10, kind: input, shape index: {}]   ;;  %s4508_s11 = inlined_call_operand.hbm [shape: f32[4,8,32], index: 11, kind: input, shape index: {}]   ;;  %s4509_s12 = inlined_call_operand.vmem [shape: f32[1,32], index: 12, kind: input, shape index: {}]   ;;  %s4510_s13 = inlined_call_operand.hbm [shape: f32[4,8,32], index: 13, kind: input, shape index: {}]   ;;  %s4511_s14 = inlined_call_operand.vmem [shape: f32[1,32], index: 14, kind: input, shape index: {}]   ;;  %s4512_s15 = inlined_call_operand.hbm [shape: f32[2,16,32], index: 15, kind: output, shape index: {0}]   ;;  %s4513_s16 = inlined_call_operand.hbm [shape: f32[2,8,32], index: 16, kind: output, shape index: {1}]  }
   0x1   :  { %4527 = sst [smem:[#allocation23_spill]] %s4497_s0 }
   0x2   :  { %4528 = sst [smem:[#allocation24_spill]] %s4509_s12  ;;  %s4532_s23 = sld [smem:[#allocation23_spill]] }
   0x3   :  { %4529 = sst [smem:[#allocation25_spill]] %s4511_s14 }
   0x4   :  { %4530 = sst [smem:[#allocation26_spill]] %s4512_s15 }
   0x5   :  { %4531 = sst [smem:[#allocation27_spill]] %s4513_s16 }
   0x8   :  { %22 = sst [smem:[#allocation2]] %s4532_s23 }
   0x9   :  { %23 = vsyncpa [#allocation4], 0 }
   0xa   :  { %24 = vsyncpa [#allocation7], 0 }
   0xb   :  { %25 = vsyncpa [#allocation5], 0 }
   0xc   :  { %27 = vsyncpa [#allocation5 + $0x1], 0 }
   0xd   :  { %28 = vsyncpa [#allocation11], 0 }
   0xe   :  { %30 = vsyncpa [#allocation11 + $0x1], 0  ;;  %s3930_s24 = smov 0   ;;  %s3932_s25 = smov 0  }
   0xf   :  { %s3934_s26 = smov 0   ;;  %s3936_s27 = smov 0  }
  0x10 LB: > { %4533 = sst [smem:[#allocation16_spill]] %s3813_s24  ;;  %s3951_s28 = sadd.s32 4294967295, %s3825_s27   ;;  %s3825_s27 = sphi %s3936_s27, %s4561_s27   ;;  %s3821_s26 = sphi %s3934_s26, %s4563_s26   ;;  %s3817_s25 = sphi %s3932_s25, %s4565_s25   ;;  %s3813_s24 = sphi %s3930_s24, %s4564_s24  }
  0x11   : > { %4534 = sst [smem:[#allocation17_spill]] %s3821_s26  ;;  %s3125_s29 = sadd.s32 4294967294, %s3825_s27  }
  0x12   : > { %4535 = sst [smem:[#allocation18_spill]] %s3825_s27  ;;  %s3955_s30 = sadd.s32 1, %s3825_s27  }
  0x13   : > { %4536 = sst [smem:[#allocation19_spill]] %s3955_s30  ;;  %s368_s0 = sadd.s32 1, %s3821_s26 }
  0x14   : > { %s365_s17 = ssub.s32 %s3825_s27, %s3955_s30  ;;  %p378_p0 = scmp.ne.s32.totalorder %s3821_s26, %s3817_s25 }
  0x15   : > { %p366_p1 = scmp.eq.s32.totalorder %s365_s17, 0  ;;  %p379_p2 = scmp.eq.s32.totalorder %s3951_s28, 1 }
  0x16   : > { %p384_p3 = scmp.ne.s32.totalorder %s3817_s25, %s3813_s24  ;;  %p385_p4 = scmp.eq.s32.totalorder %s3125_s29, 1 }
  0x17   : > { %s3966_s18 = scalar_select %p366_p1, %s3821_s26, %s368_s0  }
  0x18   : > { %p3968_p5 = por %p379_p2, %p378_p0  ;;  %p3972_p6 = por %p385_p4, %p384_p3 }
  0x19   : > { %4537 = sst [smem:[#allocation20_spill]] %s3966_s18  ;;  %p3126_p7 = scmp.ge.s32.totalorder %s3825_s27, 1 }
  0x1a   : > { %s4538_s19 = scalar_select %p3968_p5, 1, 0 }
  0x1b   : > { %s4540_s20 = scalar_select %p3972_p6, 1, 0 }
  0x1c   : > { %4539 = sst [smem:[#allocation21_spill]] %s4538_s19  ;;  %p418_p8 = scmp.lt.s32.totalorder %s3825_s27, 3 }
  0x1d   : > { %4541 = sst [smem:[#allocation22_spill]] %s4540_s20  ;;  %p4521_p9 = scmp.eq.s32.totalorder %s3951_s28, 0 }
  0x1e   : > { %p3979_p10 = pnand %p3126_p7, %p418_p8  ;;  %s3827_s22 = smov [#allocation6]  }
  0x1f   : > { %s467_s23 = sshll.u32 %s3827_s22, 4  ;;  %s3828_s0 = smov [#allocation3]   ;;  %s3985_s23 = int_to_ptr.vmem [resolvable:$true] %s467_s23 }
  0x20   : > { %s4542_s21 = scalar_select %p3979_p10, 1, 0 }
  0x21   : > { %p3499_p11 = pneg %p3979_p10  ;;  %s451_s17 = sshll.u32 %s3828_s0, 4  ;;  %s3993_s17 = int_to_ptr.vmem [resolvable:$true] %s451_s17 }
  0x22   : > { %s3829_s18 = smov [#allocation8]   ;;  %s3639_s24 = scalar_lea.hbm %s4508_s11, 512 }
  0x23   : > { %p3989_p12 = pnand %p4521_p9, %p3499_p11  ;;  %s3995_s26 = sshll.u32 %s3829_s18, 4  ;;  %s484_s26 = int_to_ptr.vmem [resolvable:$true] %s3995_s26 }
  0x24   : > { %p3640_p13 = scmp.ne.s32.totalorder %s4508_s11, %s3639_s24  ;;  %p3646_p3 = scmp.lt.u32.totalorder %s3639_s24, %s4508_s11 }
  0x25   : > { %p4005_p0 = pneg %p3989_p12 }
  0x27   : > { %p3642_p1 = pnand %p4005_p0, %p3640_p13 }
  0x29   : > { %p3643_p2 = pneg %p3642_p1 }
  0x2b   : > { %p3648_p4 = pnand %p3646_p3, %p3643_p2 }
  0x2d   : > { %3651 = shalt.err (!%p3648_p4)
}
  0x2e   : > { %s3652_s27 = scalar_lea.vmem %s3985_s23, 512  ;;  %p3660_p9 = scmp.lt.s32.totalorder %s3985_s23, %s3985_s23 }
  0x2f   : > { %p3653_p7 = scmp.ne.s32.totalorder %s3985_s23, %s3652_s27  ;;  %p3661_p6 = scmp.lt.s32.totalorder %s3652_s27, %s3652_s27 }
  0x31   : > { %p3655_p8 = pnand %p3653_p7, %p4005_p0  ;;  %p3662_p13 = por %p3661_p6, %p3660_p9 }
  0x33   : > { %p3656_p11 = pneg %p3655_p8 }
  0x35   : > { %p3663_p1 = pnand %p3662_p13, %p3656_p11 }
  0x37   : > { %3666 = shalt.err (!%p3663_p1)
}
  0x38   : > { %s3830_s30 = smov 128   ;;  %s3831_s24 = smov 8  }
  0x39   : > { %3505 = dma.hbm_to_vmem [thread:$0]  (!%p3989_p12), %s4508_s11, 512, %s3985_s23, [#allocation7], %s3830_s30, %s3830_s30, %s3831_s24  }
  0x3a   : > { %s3667_s27 = scalar_lea.hbm %s4506_s9, 512 }
  0x3b   : > { %p3668_p6 = scmp.ne.s32.totalorder %s4506_s9, %s3667_s27  ;;  %p3674_p3 = scmp.lt.u32.totalorder %s3667_s27, %s4506_s9 }
  0x3d   : > { %p3670_p9 = pnand %p3668_p6, %p4005_p0 }
  0x3f   : > { %p3671_p2 = pneg %p3670_p9 }
  0x41   : > { %p3676_p4 = pnand %p3674_p3, %p3671_p2 }
  0x43   : > { %3679 = shalt.err (!%p3676_p4)
}
  0x44   : > { %s3680_s23 = scalar_lea.vmem %s3993_s17, 512  ;;  %p3688_p13 = scmp.lt.s32.totalorder %s3993_s17, %s3993_s17 }
  0x45   : > { %p3681_p7 = scmp.ne.s32.totalorder %s3993_s17, %s3680_s23  ;;  %p3689_p1 = scmp.lt.s32.totalorder %s3680_s23, %s3680_s23 }
  0x47   : > { %p3683_p8 = pnand %p3681_p7, %p4005_p0  ;;  %p3690_p6 = por %p3689_p1, %p3688_p13 }
  0x49   : > { %p3684_p11 = pneg %p3683_p8 }
  0x4b   : > { %p3691_p9 = pnand %p3690_p6, %p3684_p11 }
  0x4d   : > { %3694 = shalt.err (!%p3691_p9)
}
  0x4e   : > { %3502 = dma.hbm_to_vmem [thread:$0]  (!%p3989_p12), %s4506_s9, 512, %s3993_s17, [#allocation4], %s3830_s30, %s3830_s30, %s3831_s24  }
  0x4f   : > { %s3695_s20 = scalar_lea.hbm %s4510_s13, 512 }
  0x50   : > { %p3696_p2 = scmp.ne.s32.totalorder %s4510_s13, %s3695_s20  ;;  %p3702_p7 = scmp.lt.u32.totalorder %s3695_s20, %s4510_s13 }
  0x52   : > { %p3698_p3 = pnand %p3696_p2, %p4005_p0 }
  0x54   : > { %p3699_p4 = pneg %p3698_p3 }
  0x56   : > { %p3704_p8 = pnand %p3702_p7, %p3699_p4 }
  0x58   : > { %3707 = shalt.err (!%p3704_p8)
}
  0x59   : > { %s3708_s23 = scalar_lea.vmem %s484_s26, 512  ;;  %p3716_p6 = scmp.lt.s32.totalorder %s484_s26, %s484_s26 }
  0x5a   : > { %p3709_p11 = scmp.ne.s32.totalorder %s484_s26, %s3708_s23  ;;  %p3717_p9 = scmp.lt.s32.totalorder %s3708_s23, %s3708_s23 }
  0x5c   : > { %p3711_p13 = pnand %p3709_p11, %p4005_p0  ;;  %p3718_p5 = por %p3717_p9, %p3716_p6 }
  0x5e   : > { %p3712_p1 = pneg %p3711_p13 }
  0x60   : > { %p3719_p10 = pnand %p3718_p5, %p3712_p1 }
  0x62   : > { %3722 = shalt.err (!%p3719_p10)
}
  0x63   : > { %3508 = dma.hbm_to_vmem [thread:$0]  (!%p3989_p12), %s4510_s13, 512, %s484_s26, [#allocation7], %s3830_s30, %s3830_s30, %s3831_s24  }
  0x64   : > { %p4545_p2 = scmp.ne.s32.totalorder %s4542_s21, 0 }
  0x65   : > { %p4546_p0 = scmp.eq.s32.totalorder (!%p4545_p2), %s3951_s28, 0 }
  0x66   : > { %517 = sbr.rel (%p4545_p2) target bundleno = 1479 (0x5c7), region = 80 }
  0x6d   : > { %3796 = dma.done.wait (%p4546_p0), [#allocation4], 512   ;;  %p4547_p3 = pmov %p4546_p0 }
  0x6e   : > { %p4548_p5 = pmov %p4546_p0 }
  0x6f   : > { %3798 = vsyncadd (%p4547_p3), [#allocation4], 4294966784 }
  0x70   : > { %3800 = dma.done.wait (%p4548_p5), [#allocation7], 1024   ;;  %p4549_p10 = pmov %p4546_p0 }
  0x71   : > { %p584_p4 = scmp.lt.s32.totalorder %s3951_s28, 1  ;;  %v3832_v0 = vmov 0.0|0.0   ;;  %vm3833_vm0 = vmmov 0   ;;  %v3834_v1 = vmov 0.0   ;;  %v596_v2 = vld [vmem:[%s4500_s3] sm:$0xff]  ;;  %v597_v3 = vld [vmem:[%s4500_s3 + $0x8] sm:$0xff] }
  0x72   : > { %3802 = vsyncadd (%p4549_p10), [#allocation7], 4294966272  ;;  %3451 = vmatprep.subr.bf16.mxu1 %v3832_v0  ;;  %3310 = vmatprep.mubr.msk.f32.mxu1 %vm3833_vm0, %v3834_v1  ;;  %v703_v4 = vld [vmem:[%s4502_s5] sm:$0xff]  ;;  %vm607_vm1 = vcmask 261120   ;;  %v3443_v5 = vpack.c.bf16 %v597_v3, %v596_v2  ;;  %v704_v6 = vld [vmem:[%s4502_s5 + $0x8] sm:$0xff]  ;;  %vm794_vm2 = vcmask 64512  }
  0x73   : > { %s585_s16 = scalar_select %p584_p4, %s3951_s28, 1  ;;  %v598_v7 = vld [vmem:[%s4500_s3 + $0x10] sm:$0xff]  ;;  %v599_v8 = vld [vmem:[%s4500_s3 + $0x18] sm:$0xff]  ;;  %v3452_v9 = vpack.c.bf16 %v704_v6, %v703_v4  ;;  %v3143_v17 = vld [vmem:[%s4503_s6] ss:$0 sm:$0xff]  ;;  %vm1998_vm3 = vcmask 130048  }
  0x74   : > { %v3447_v10 = vpack.c.bf16 %v599_v8, %v598_v7  ;;  %v705_v11 = vld [vmem:[%s4502_s5 + $0x10] sm:$0xff]  ;;  %v706_v12 = vld [vmem:[%s4502_s5 + $0x18] sm:$0xff]  ;;  %3444 = vmatprep.subr.bf16.mxu0 %v3443_v5  ;;  %v3140_v18 = vld [vmem:[%s4501_s4] ss:$0 sm:$0xff]  ;;  %s3836_s27 = smov 112   ;;  %s3837_s23 = smov 104  }
  0x75   : > { %s3211_s26 = sshll.u32 %s585_s16, 4  ;;  %s3139_s14 = sshll.u32 %s585_s16, 3  ;;  %3453 = vmatpush3.bf16.msra.mxu1 %v3452_v9  ;;  %3446 = vmatpush3.bf16.msra.mxu0 %v3443_v5  ;;  %v3455_v14 = vpack.c.bf16 %v706_v12, %v705_v11  ;;  %v1145_v27 = vld [vmem:[%s4504_s7] sm:$0xff]  ;;  %v1146_v28 = vld [vmem:[%s4504_s7 + $0x8] sm:$0xff]  ;;  %v1147_v34 = vld [vmem:[%s4504_s7 + $0x10] sm:$0xff] }
  0x76   : > { %s588_s30 = scalar_lea.vmem %s4498_s1, %s3211_s26  ;;  %3454 = vmatprep.subr.bf16.mxu1 %v3832_v0  ;;  %3448 = vmatprep.subr.bf16.mxu0 %v3447_v10  ;;  %s592_s20 = scalar_lea.vmem %s4499_s2, %s3139_s14  ;;  %v3457_v30 = vpack.c.bf16 %v1146_v28, %v1145_v27  ;;  %v1148_v35 = vld [vmem:[%s4504_s7 + $0x18] sm:$0xff]  ;;  %v1251_v38 = vld [vmem:[#allocation3] sm:$0xff]  ;;  %v1252_v39 = vld [vmem:[#allocation3 + $0x8] sm:$0xff] }
  0x77   : > { %v4119_v13 = vld [vmem:[%s588_s30] sm:$0xff]  ;;  %v4127_v15 = vld [vmem:[%s588_s30 + $0x8] sm:$0xff]  ;;  %s3835_s30 = smov 120   ;;  %v3461_v37 = vpack.c.bf16 %v1148_v35, %v1147_v34  ;;  %v3466_v42 = vpack.c.bf16 %v1252_v39, %v1251_v38  ;;  %v1253_v43 = vld [vmem:[#allocation3 + $0x10] sm:$0xff]  ;;  %s1119_s19 = sld [smem:[#allocation2]] }
  0x78   : > { %3299 = vmatprep.mubr.msk.f32.mxu0 %vm607_vm1, %v4119_v13  ;;  %v4129_v16 = vld [vmem:[%s592_s20] sm:$0xff]  ;;  %v1254_v44 = vld [vmem:[#allocation3 + $0x18] sm:$0xff]  ;;  %s4397_s18 = sand.u32 1, %s3817_s25   ;;  %s4550_s17 = sld [smem:[#allocation24_spill]] }
  0x79   : > { %3456 = vmatpush3.bf16.msra.mxu1 %v3455_v14  ;;  %3450 = vmatpush3.bf16.msra.mxu0 %v3447_v10  ;;  %v3469_v46 = vpack.c.bf16 %v1254_v44, %v1253_v43  ;;  %s4551_s12 = sld [smem:[#allocation21_spill]]  ;;  %s3212_s26 = sshll.u32 %s3951_s28, 8 }
  0x7a   : > { %s4552_s15 = sld [smem:[#allocation26_spill]]  ;;  %s2957_s20 = scalar_lea.sflag [#allocation5], %s4397_s18 }
  0x7b   : > { %s3838_s22 = smov [#allocation9]  }
  0x7c   : > { %3311 = vmatmul.mubr.msk.f32.vlgmr.msra.gmra.mrb[0].mxu1 %vm607_vm1, %v4129_v16  ;;  %3300 = vmatmul.mubr.msk.f32.vlgmr.msra.gmra.mrb[0].mxu0 %vm607_vm1, %v4127_v15  ;;  %s3727_s0 = sshll.u32 %s3838_s22, 4  ;;  %s3728_s0 = int_to_ptr.vmem [resolvable:$false] %s3727_s0 }
  0x7d   : > { %v1120_v47 = vstv %s1119_s19 }
  0x7f   : > { %p4553_p7 = scmp.ne.s32.totalorder %s4551_s12, 0 }
  0x80   : > { %s4411_s19 = scalar_lea.hbm %s4552_s15, %s3212_s26 }
 0x14f   : > { %v783_v19 = vpop.f32.mrb[0].mxu1  ;;  %v3301_v20 = vpop.f32.mrb[0].mxu0 }
 0x150   : > { %v784_v21 = vadd.f32 %v3143_v17, %v783_v19  ;;  %v686_v22 = vadd.f32 %v3301_v20, %v3140_v18  ;;  %v3312_v23 = vpop.f32.mrb[1].mxu1  ;;  %v680_v24 = vpop.f32.mrb[1].mxu0 }
 0x151   : > { %v681_v25 = vadd.f32 %v3140_v18, %v680_v24 }
 0x152   : > { %788 = vrot.lane.b32.xlu0 %v784_v21, %s3835_s30  ;;  %3313 = vmatprep.subr.msk.mxu0 %vm794_vm2, %v784_v21 }
 0x153   : > { %3314 = vmatpush3.xpose.msk.msra.mxu0 %vm794_vm2, %v784_v21  ;;  %693 = vrot.lane.b32.xlu1 %v686_v22, %s3835_s30 }
 0x154   : > { %3315 = vmatprep.mubr.msk.f32.mxu0 %vm794_vm2, %v681_v25 }
 0x156   : > { %790 = vrot.lane.b32.xlu0 %v784_v21, %s3836_s27  ;;  %3316 = vmatmul.mubr.msk.f32.vlgmr.msra.gmra.mrb[2].mxu0 %vm794_vm2, %v686_v22 }
 0x157   : > { %691 = vrot.lane.b32.xlu1 %v681_v25, %s3835_s30 }
 0x15a   : > { %792 = vrot.lane.b32.xlu0 %v784_v21, %s3837_s23 }
 0x15b   : > { %695 = vrot.lane.b32.xlu1 %v681_v25, %s3836_s27 }
 0x15e   : > { %697 = vrot.lane.b32.xlu0 %v686_v22, %s3836_s27 }
 0x15f   : > { %699 = vrot.lane.b32.xlu1 %v681_v25, %s3837_s23 }
 0x162   : > { %701 = vrot.lane.b32.xlu0 %v686_v22, %s3837_s23 }
 0x1c4   : > { %v789_v26 = vpop.permute.xlu0 %788 }
 0x1c5   : > { %3318 = vmatprep.subr.msk.mxu1 %vm794_vm2, %v789_v26  ;;  %v694_v29 = vpop.permute.xlu1 %693 }
 0x1c6   : > { %3319 = vmatpush3.xpose.msk.msra.mxu1 %vm794_vm2, %v789_v26  ;;  %v3168_v26 = vld [vmem:[%s4507_s10] ss:$0 sm:$0xff] }
 0x1c8   : > { %v791_v31 = vpop.permute.xlu0 %790 }
 0x1c9   : > { %3323 = vmatprep.subr.msk.mxu0 %vm794_vm2, %v791_v31  ;;  %v692_v32 = vpop.permute.xlu1 %691 }
 0x1ca   : > { %3320 = vmatprep.mubr.msk.f32.mxu1 %vm794_vm2, %v692_v32  ;;  %3324 = vmatpush3.xpose.msk.msra.mxu0 %vm794_vm2, %v791_v31 }
 0x1cb   : > { %3321 = vmatmul.mubr.msk.f32.vlgmr.msra.gmra.mrb[2].mxu1 %vm794_vm2, %v694_v29  ;;  %3458 = vmatprep.subr.bf16.mxu0 %v3457_v30 }
 0x1cc   : > { %v793_v33 = vpop.permute.xlu0 %792 }
 0x1cd   : > { %3328 = vmatprep.subr.msk.mxu1 %vm794_vm2, %v793_v33  ;;  %v696_v36 = vpop.permute.xlu1 %695 }
 0x1ce   : > { %3325 = vmatprep.mubr.msk.f32.mxu0 %vm794_vm2, %v696_v36  ;;  %3329 = vmatpush3.xpose.msk.msra.mxu1 %vm794_vm2, %v793_v33 }
 0x1cf   : > { %3465 = vmatprep.subr.bf16.mxu1 %v3832_v0 }
 0x1d0   : > { %v698_v40 = vpop.permute.xlu0 %697 }
 0x1d1   : > { %v700_v41 = vpop.permute.xlu1 %699  ;;  %3326 = vmatmul.mubr.msk.f32.vlgmr.msra.gmra.mrb[4].mxu0 %vm794_vm2, %v698_v40 }
 0x1d2   : > { %3330 = vmatprep.mubr.msk.f32.mxu1 %vm794_vm2, %v700_v41  ;;  %3460 = vmatpush3.bf16.msra.mxu0 %v3457_v30 }
 0x1d3   : > { %3462 = vmatprep.subr.bf16.mxu0 %v3461_v37  ;;  %3341 = vmatprep.mubr.msk.f32.mxu0 %vm607_vm1, %v4119_v13 }
 0x1d4   : > { %v702_v45 = vpop.permute.xlu0 %701 }
 0x1d5   : > { %3331 = vmatmul.mubr.msk.f32.vlgmr.msra.gmra.mrb[4].mxu1 %vm794_vm2, %v702_v45 }
 0x1d6   : > { %3464 = vmatpush3.bf16.msra.mxu0 %v3461_v37  ;;  %3467 = vmatpush3.bf16.msra.mxu1 %v3466_v42 }
 0x1d7   : > { %3468 = vmatprep.subr.bf16.mxu1 %v3832_v0  ;;  %3352 = vmatprep.mubr.msk.f32.mxu1 %vm3833_vm0, %v3834_v1 }
 0x1d9   : > { %3342 = vmatmul.mubr.msk.f32.vlgmr.msra.gmra.mrb[6].mxu0 %vm607_vm1, %v4127_v15 }
 0x1da   : > { %3470 = vmatpush3.bf16.msra.mxu1 %v3469_v46 }
 0x1dd   : > { %3353 = vmatmul.mubr.msk.f32.vlgmr.msra.gmra.mrb[6].mxu1 %vm607_vm1, %v4129_v16  ;;  %v3165_v16 = vld [vmem:[%s4505_s8] ss:$0 sm:$0xff] }
 0x229   : > { %v3317_v48 = vpop.f32.mrb[2].mxu0 }
 0x22a   : > { %v1122_v49 = vsub.f32 %v3317_v48, %v1120_v47  ;;  %v867_v50 = vpop.f32.mrb[3].mxu0 }
 0x22b   : > { %v1121_v51 = vsub.f32 %v867_v50, %v1120_v47 }
 0x22c   : > { %v4188_v52 = vclamps-f32 %v1122_v49, 50000.0 }
 0x22d   : > { %v4190_v53 = vclamps-f32 %v1121_v51, 50000.0 }
 0x22e   : > { %v1345_v54 = vsel %vm794_vm2, %v4188_v52, -inf }
 0x22f   : > { %1346 = vmax.xlane.f32.xlu0 %v1345_v54  ;;  %v1342_v55 = vsel %vm794_vm2, %v4190_v53, -inf }
 0x230   : > { %1343 = vmax.xlane.f32.xlu1 %v1342_v55  ;;  %v4196_v56 = vmax.f32 %v1342_v55, %v1345_v54 }
 0x232   : > { %v1431_v43 = vrot.slane %v4196_v56, 4 }
 0x234   : > { %v1432_v45 = vmax.f32 %v4196_v56, %v1431_v43 }
 0x29e   : > { %v3322_v57 = vpop.f32.mrb[2].mxu1 }
 0x29f   : > { %v1124_v58 = vsub.f32 %v3322_v57, %v1120_v47  ;;  %v948_v59 = vpop.f32.mrb[3].mxu1 }
 0x2a0   : > { %v1123_v60 = vsub.f32 %v948_v59, %v1120_v47 }
 0x2a1   : > { %v4198_v61 = vclamps-f32 %v1124_v58, 50000.0 }
 0x2a2   : > { %v4200_v62 = vclamps-f32 %v1123_v60, 50000.0 }
 0x2a3   : > { %v1351_v63 = vsel %vm794_vm2, %v4198_v61, -inf }
 0x2a4   : > { %1352 = vmax.xlane.f32.xlu1 %v1351_v63  ;;  %v3327_v2 = vpop.f32.mrb[4].mxu0  ;;  %v1348_v3 = vsel %vm794_vm2, %v4200_v62, -inf }
 0x2a5   : > { %v1126_v4 = vsub.f32 %v3327_v2, %v1120_v47  ;;  %v1437_v5 = vmax.f32 %v1348_v3, %v1351_v63  ;;  %1349 = vmax.xlane.f32.xlu0 %v1348_v3  ;;  %v1029_v6 = vpop.f32.mrb[5].mxu0 }
 0x2a6   : > { %v1125_v7 = vsub.f32 %v1029_v6, %v1120_v47 }
 0x2a7   : > { %v4206_v8 = vclamps-f32 %v1126_v4, 50000.0  ;;  %v1438_v44 = vrot.slane %v1437_v5, 4 }
 0x2a8   : > { %v4208_v9 = vclamps-f32 %v1125_v7, 50000.0  ;;  %v3332_v10 = vpop.f32.mrb[4].mxu1 }
 0x2a9   : > { %v1128_v11 = vsub.f32 %v3332_v10, %v1120_v47  ;;  %v1110_v12 = vpop.f32.mrb[5].mxu1  ;;  %v1357_v13 = vsel %vm794_vm2, %v4206_v8, -inf  ;;  %v1439_v46 = vmax.f32 %v1437_v5, %v1438_v44 }
 0x2aa   : > { %v1127_v14 = vsub.f32 %v1110_v12, %v1120_v47  ;;  %1358 = vmax.xlane.f32.xlu1 %v1357_v13  ;;  %v1354_v15 = vsel %vm794_vm2, %v4208_v9, -inf  ;;  %v1433_v47 = vrot.slane %v1432_v45, 2 }
 0x2ab   : > { %v4217_v17 = vclamps-f32 %v1128_v11, 50000.0  ;;  %1355 = vmax.xlane.f32.xlu0 %v1354_v15  ;;  %v1444_v18 = vmax.f32 %v1354_v15, %v1357_v13  ;;  %v1440_v49 = vrot.slane %v1439_v46, 2 }
 0x2ac   : > { %v4219_v19 = vclamps-f32 %v1127_v14, 50000.0  ;;  %v3343_v20 = vpop.f32.mrb[6].mxu0  ;;  %v1434_v51 = vmax.f32 %v1432_v45, %v1433_v47 }
 0x2ad   : > { %v1363_v21 = vsel %vm794_vm2, %v4217_v17, -inf  ;;  %v4223_v22 = vadd.f32 %v3343_v20, %v3165_v16  ;;  %v1222_v23 = vpop.f32.mrb[7].mxu0  ;;  %v1445_v50 = vrot.slane %v1444_v18, 4  ;;  %v1441_v55 = vmax.f32 %v1439_v46, %v1440_v49 }
 0x2ae   : > { %1364 = vmax.xlane.f32.xlu1 %v1363_v21  ;;  %v1360_v24 = vsel %vm794_vm2, %v4219_v19, -inf  ;;  %v4227_v25 = vadd.f32 %v3165_v16, %v1222_v23  ;;  %v1435_v58 = vrot.slane %v1434_v51, 1 }
 0x2af   : > { %v1451_v27 = vmax.f32 %v1360_v24, %v1363_v21  ;;  %1361 = vmax.xlane.f32.xlu0 %v1360_v24  ;;  %v1446_v57 = vmax.f32 %v1444_v18, %v1445_v50  ;;  %v1442_v60 = vrot.slane %v1441_v55, 1 }
 0x2b0   : > { %v4234_v28 = vpack.i.bf16 %v4223_v22, %v4227_v25  ;;  %v1328_v29 = vpop.f32.mrb[6].mxu1  ;;  %v3472_v30 = vpack.c.bf16 %v4223_v22, %v4227_v25  ;;  %v1436_v6 = vmax.f32 %v1434_v51, %v1435_v58 }
 0x2b1   : > { %v1329_v31 = vadd.f32 %v3168_v26, %v1328_v29  ;;  %v3354_v32 = vpop.f32.mrb[7].mxu1  ;;  %v1452_v48 = vrot.slane %v1451_v27, 4  ;;  %v1447_v63 = vrot.slane %v1446_v57, 2  ;;  %v1443_v10 = vmax.f32 %v1441_v55, %v1442_v60 }
 0x2b2   : > { %v1458_v13 = vsub.f32 %v4190_v53, %v1436_v6  ;;  %v1459_v16 = vsub.f32 %v4188_v52, %v1436_v6 }
 0x2b3   : > { %3355 = vmatprep.subr.mxu0 %v1329_v31  ;;  %v1453_v54 = vmax.f32 %v1451_v27, %v1452_v48  ;;  %v1448_v11 = vmax.f32 %v1446_v57, %v1447_v63  ;;  %v1460_v21 = vsub.f32 %v4200_v62, %v1443_v10  ;;  %v1461_v26 = vsub.f32 %v4198_v61, %v1443_v10 }
 0x2b4   : > { %3356 = vmatpush3.msra.mxu0 %v1329_v31  ;;  %v3170_v29 = vclamps-f32 %v1458_v13, 50000.0 }
 0x2b5   : > { %v1454_v59 = vrot.slane %v1453_v54, 2  ;;  %v1449_v23 = vrot.slane %v1448_v11, 1 }
 0x2b7   : > { %v1455_v7 = vmax.f32 %v1453_v54, %v1454_v59 }
 0x2b9   : > { %v1456_v14 = vrot.slane %v1455_v7, 1 }
 0x2bc   : > { %v1347_v34 = vpop.xlane.xlu0 %1346 }
 0x2bd   : > { %v1344_v33 = vpop.xlane.xlu1 %1343  ;;  %v1367_v36 = vsub.f32 %v4188_v52, %v1347_v34 }
 0x2be   : > { %v1366_v35 = vsub.f32 %v4190_v53, %v1344_v33  ;;  %v3171_v33 = vclamps-f32 %v1459_v16, 50000.0 }
 0x2bf   : > { %3574 = vrot.lane.b32.xlu1 %v4234_v28, %s3836_s27  ;;  %v1376_v38 = vmul.f32 1.442695, %v1367_v36  ;;  %v1450_v36 = vmax.f32 %v1448_v11, %v1449_v23 }
 0x2c0   : > { %v1374_v37 = vmul.f32 1.442695, %v1366_v35  ;;  %v3172_v35 = vclamps-f32 %v1460_v21, 50000.0  ;;  %v1484_v45 = vmul.f32 1.442695, %v3171_v33 }
 0x2c1   : > { %v1462_v50 = vsub.f32 %v4208_v9, %v1450_v36  ;;  %v1463_v54 = vsub.f32 %v4206_v8, %v1450_v36 }
 0x2c2   : > { %3583 = vpow2.f32 %v1374_v37  ;;  %v3173_v37 = vclamps-f32 %v1461_v26, 50000.0  ;;  %v1486_v49 = vmul.f32 1.442695, %v3172_v35 }
 0x2c3   : > { %1336 = vrot.lane.b32.xlu1 %v1329_v31, %s3836_s27  ;;  %3585 = vpow2.f32 %v1376_v38 }
 0x2c4   : > { %v1488_v51 = vmul.f32 1.442695, %v3173_v37 }
 0x2c5   : > { %3569 = vrot.lane.b32.xlu0 %v4234_v28, %s3835_s30 }
 0x2c7   : > { %1339 = vrot.lane.b32.xlu1 %v1329_v31, %s3837_s23 }
 0x2c9   : > { %1333 = vrot.lane.b32.xlu0 %v1329_v31, %s3835_s30  ;;  %v1457_v31 = vmax.f32 %v1455_v7, %v1456_v14  ;;  %s3135_s30 = sshll.u32 %s4397_s18, 4 }
 0x2ca   : > { %s576_s21 = scalar_lea.vmem [#allocation9], %s3135_s30  ;;  %s3729_s30 = scalar_lea.vmem %s3728_s0, 512 }
 0x2cb   : > { %v1465_v46 = vsub.f32 %v4217_v17, %v1457_v31  ;;  %s2975_s29 = sshll.u32 %s576_s21, 4  ;;  %s4413_s29 = int_to_ptr.vmem [resolvable:$true] %s2975_s29 }
 0x2cc   : > { %v4247_v39 = vpop.eup %3583  ;;  %s3723_s16 = scalar_lea.vmem %s4413_s29, 256  ;;  %p3730_p13 = scmp.lt.s32.totalorder %s4413_s29, %s3728_s0 }
 0x2cd   : > { %v4249_v40 = vpop.eup %3585  ;;  %v1390_v41 = vsel %vm794_vm2, %v4247_v39, 0.0  ;;  %v3177_v58 = vclamps-f32 %v1465_v46, 50000.0  ;;  %p3724_p12 = scmp.ne.s32.totalorder %s4413_s29, %s3723_s16  ;;  %p3731_p1 = scmp.lt.s32.totalorder %s3729_s30, %s3723_s16 }
 0x2ce   : > { %v1393_v42 = vsel %vm794_vm2, %v4249_v40, 0.0 }
 0x2cf   : > { %v1496_v6 = vmul.f32 1.442695, %v3177_v58  ;;  %p3725_p8 = pnand %p3724_p12, %p4553_p7  ;;  %p3732_p6 = por %p3731_p1, %p3730_p13 }
 0x2d1   : > { %p3726_p11 = pneg %p3725_p8 }
 0x2d3   : > { %p3733_p9 = pnand %p3732_p6, %p3726_p11 }
 0x2e8   : > { %1391 = vadd.xlane.f32.xlu0 %v1390_v41  ;;  %v1482_v41 = vmul.f32 1.442695, %v3170_v29 }
 0x2eb   : > { %1394 = vadd.xlane.f32.xlu1 %v1393_v42 }
 0x331   : > { %v1353_v2 = vpop.xlane.xlu1 %1352 }
 0x332   : > { %v1369_v3 = vsub.f32 %v4198_v61, %v1353_v2  ;;  %v1350_v4 = vpop.xlane.xlu0 %1349  ;;  %v1464_v61 = vsub.f32 %v4219_v19, %v1457_v31 }
 0x333   : > { %v1368_v56 = vsub.f32 %v4200_v62, %v1350_v4 }
 0x334   : > { %v1380_v5 = vmul.f32 1.442695, %v1369_v3 }
 0x335   : > { %v1378_v12 = vmul.f32 1.442695, %v1368_v56 }
 0x336   : > { %3587 = vpow2.f32 %v1380_v5 }
 0x337   : > { %3589 = vpow2.f32 %v1378_v12  ;;  %v1359_v15 = vpop.xlane.xlu1 %1358 }
 0x338   : > { %v1371_v18 = vsub.f32 %v4206_v8, %v1359_v15  ;;  %v1356_v20 = vpop.xlane.xlu0 %1355  ;;  %v3175_v8 = vclamps-f32 %v1463_v54, 50000.0 }
 0x339   : > { %v1370_v24 = vsub.f32 %v4208_v9, %v1356_v20  ;;  %v3174_v9 = vclamps-f32 %v1462_v50, 50000.0 }
 0x33a   : > { %v1384_v27 = vmul.f32 1.442695, %v1371_v18  ;;  %v1492_v10 = vmul.f32 1.442695, %v3175_v8 }
 0x33b   : > { %v1382_v32 = vmul.f32 1.442695, %v1370_v24  ;;  %v1365_v53 = vpop.xlane.xlu1 %1364  ;;  %v1490_v56 = vmul.f32 1.442695, %v3174_v9 }
 0x33c   : > { %3591 = vpow2.f32 %v1384_v27  ;;  %v1373_v34 = vsub.f32 %v4217_v17, %v1365_v53  ;;  %v1362_v52 = vpop.xlane.xlu0 %1361  ;;  %v3176_v17 = vclamps-f32 %v1464_v61, 50000.0 }
 0x33d   : > { %3593 = vpow2.f32 %v1382_v32  ;;  %v1372_v62 = vsub.f32 %v4219_v19, %v1362_v52 }
 0x33e   : > { %v1388_v38 = vmul.f32 1.442695, %v1373_v34  ;;  %v1494_v2 = vmul.f32 1.442695, %v3176_v17 }
 0x33f   : > { %v1386_v42 = vmul.f32 1.442695, %v1372_v62  ;;  %v4268_v43 = vpop.permute.xlu1 %3574 }
 0x340   : > { %v4270_v44 = vpop.eup %3587  ;;  %3595 = vpow2.f32 %v1388_v38  ;;  %v4273_v47 = vpop.permute.xlu0 %3569  ;;  %v3577_v25 = vunpack.i.h.bf16 %v4268_v43 }
 0x341   : > { %v4275_v48 = vpop.eup %3589  ;;  %3597 = vpow2.f32 %v1386_v42  ;;  %v1399_v19 = vsel %vm794_vm2, %v4270_v44, 0.0 }
 0x342   : > { %1400 = vadd.xlane.f32.xlu1 %v1399_v19  ;;  %v1396_v55 = vsel %vm794_vm2, %v4275_v48, 0.0  ;;  %3599 = vpow2.f32 %v1482_v41 }
 0x343   : > { %1397 = vadd.xlane.f32.xlu0 %v1396_v55  ;;  %v4283_v57 = vpop.permute.xlu1 %1336  ;;  %3601 = vpow2.f32 %v1484_v45 }
 0x344   : > { %v1334_v59 = vpop.permute.xlu0 %1333  ;;  %3365 = vmatprep.subr.mxu0 %v4283_v57  ;;  %3603 = vpow2.f32 %v1486_v49 }
 0x345   : > { %3360 = vmatprep.subr.mxu1 %v1334_v59  ;;  %3605 = vpow2.f32 %v1488_v51 }
 0x346   : > { %v4286_v60 = vpop.eup %3591  ;;  %3361 = vmatpush3.msra.mxu1 %v1334_v59  ;;  %3607 = vpow2.f32 %v1494_v2 }
 0x347   : > { %v4288_v63 = vpop.eup %3593  ;;  %v1405_v3 = vsel %vm794_vm2, %v4286_v60, 0.0  ;;  %v4292_v4 = vpop.permute.xlu1 %1339  ;;  %3609 = vpow2.f32 %v1496_v6 }
 0x348   : > { %1406 = vadd.xlane.f32.xlu1 %v1405_v3  ;;  %v1402_v7 = vsel %vm794_vm2, %v4288_v63, 0.0  ;;  %3370 = vmatprep.subr.mxu1 %v4292_v4  ;;  %3611 = vpow2.f32 %v1490_v56 }
 0x349   : > { %1403 = vadd.xlane.f32.xlu0 %v1402_v7  ;;  %3613 = vpow2.f32 %v1492_v10 }
 0x34a   : > { %v4297_v5 = vpop.eup %3595 }
 0x34b   : > { %v4299_v11 = vpop.eup %3597  ;;  %v1411_v12 = vsel %vm794_vm2, %v4297_v5, 0.0 }
 0x34c   : > { %1412 = vadd.xlane.f32.xlu1 %v1411_v12  ;;  %v1408_v13 = vsel %vm794_vm2, %v4299_v11, 0.0  ;;  %v3600_v14 = vpop.eup %3599 }
 0x34d   : > { %1409 = vadd.xlane.f32.xlu0 %v1408_v13  ;;  %v3602_v15 = vpop.eup %3601  ;;  %v1498_v20 = vsel %vm794_vm2, %v3600_v14, 0.0 }
 0x34e   : > { %v3604_v16 = vpop.eup %3603  ;;  %v1499_v21 = vsel %vm794_vm2, %v3602_v15, 0.0 }
 0x34f   : > { %v4305_v18 = vpop.eup %3605  ;;  %v1507_v23 = vsel %vm794_vm2, %v3604_v16, 0.0  ;;  %v1500_v26 = vadd.f32 %v1499_v21, %v1498_v20 }
 0x350   : > { %v1508_v24 = vsel %vm794_vm2, %v4305_v18, 0.0  ;;  %v3608_v27 = vpop.eup %3607 }
 0x351   : > { %v4312_v29 = vpop.eup %3609  ;;  %v1509_v31 = vadd.f32 %v1508_v24, %v1507_v23  ;;  %v1501_v33 = vrot.slane %v1500_v26, 4  ;;  %v1525_v34 = vsel %vm794_vm2, %v3608_v27, 0.0 }
 0x352   : > { %v3612_v32 = vpop.eup %3611  ;;  %v1526_v52 = vsel %vm794_vm2, %v4312_v29, 0.0 }
 0x353   : > { %v4314_v53 = vpop.eup %3613  ;;  %v1510_v35 = vrot.slane %v1509_v31, 4  ;;  %v1516_v36 = vsel %vm794_vm2, %v3612_v32, 0.0  ;;  %v1502_v37 = vadd.f32 %v1501_v33, %v1500_v26  ;;  %v1527_v38 = vadd.f32 %v1526_v52, %v1525_v34 }
 0x354   : > { %v1517_v62 = vsel %vm794_vm2, %v4314_v53, 0.0 }
 0x355   : > { %v1511_v41 = vadd.f32 %v1510_v35, %v1509_v31  ;;  %v1518_v61 = vadd.f32 %v1517_v62, %v1516_v36  ;;  %v1503_v42 = vrot.slane %v1502_v37, 2  ;;  %v1528_v45 = vrot.slane %v1527_v38, 4 }
 0x357   : > { %v1512_v46 = vrot.slane %v1511_v41, 2  ;;  %v1519_v49 = vrot.slane %v1518_v61, 4  ;;  %v1504_v50 = vadd.f32 %v1503_v42, %v1502_v37  ;;  %v1529_v19 = vadd.f32 %v1528_v45, %v1527_v38 }
 0x359   : > { %v1513_v51 = vadd.f32 %v1512_v46, %v1511_v41  ;;  %v1520_v54 = vadd.f32 %v1519_v49, %v1518_v61  ;;  %v1505_v55 = vrot.slane %v1504_v50, 1  ;;  %v1530_v17 = vrot.slane %v1529_v19, 2 }
 0x35a   : > { %v3572_v49 = vunpack.i.h.bf16 %v4273_v47 }
 0x35b   : > { %v1514_v58 = vrot.slane %v1513_v51, 1  ;;  %v1521_v59 = vrot.slane %v1520_v54, 2  ;;  %v1506_v9 = vadd.f32 %v1505_v55, %v1504_v50  ;;  %v1531_v8 = vadd.f32 %v1530_v17, %v1529_v19  ;;  %v2291_v19 = vld [vmem:[#allocation6] sm:$0xff]  ;;  %v2292_v55 = vld [vmem:[#allocation6 + $0x8] sm:$0xff]  ;;  %v2293_v17 = vld [vmem:[#allocation6 + $0x10] sm:$0xff] }
 0x35d   : > { %v1515_v2 = vadd.f32 %v1514_v58, %v1513_v51  ;;  %v1522_v3 = vadd.f32 %v1521_v59, %v1520_v54  ;;  %3615 = vrcp.f32 %v1506_v9  ;;  %v1532_v6 = vrot.slane %v1531_v8, 1  ;;  %v2294_v58 = vld [vmem:[#allocation6 + $0x18] sm:$0xff] }
 0x35f   : > { %3617 = vrcp.f32 %v1515_v2  ;;  %v1523_v7 = vrot.slane %v1522_v3, 1  ;;  %v1533_v56 = vadd.f32 %v1532_v6, %v1531_v8 }
 0x363   : > { %3579 = vrot.lane.b32.xlu0 %v4234_v28, %s3837_s23  ;;  %v1524_v28 = vadd.f32 %v1523_v7, %v1522_v3  ;;  %v2619_v7 = vld [vmem:[#allocation8] sm:$0xff] }
 0x367   : > { %v3616_v13 = vpop.eup %3615 }
 0x368   : > { %v1538_v21 = vmul.f32 %v3616_v13, %v3600_v14  ;;  %v1539_v26 = vmul.f32 %v3616_v13, %v3602_v15 }
 0x369   : > { %v3618_v20 = vpop.eup %3617 }
 0x36a   : > { %v1540_v23 = vmul.f32 %v3618_v20, %v3604_v16  ;;  %v1541_v52 = vmul.f32 %v3618_v20, %v4305_v18 }
 0x375   : > { %v1392_v10 = vpop.xlane.xlu0 %1391 }
 0x376   : > { %3619 = vrcp.f32 %v1392_v10 }
 0x377   : > { %3621 = vrcp.f32 %v1533_v56 }
 0x378   : > { %v1395_v12 = vpop.xlane.xlu1 %1394 }
 0x379   : > { %3623 = vrcp.f32 %v1395_v12  ;;  %v2621_v12 = vld [vmem:[#allocation8 + $0x10] sm:$0xff] }
 0x37a   : > { %3625 = vrcp.f32 %v1524_v28  ;;  %v2620_v28 = vld [vmem:[#allocation8 + $0x8] sm:$0xff] }
 0x37f   : > { %1870 = vxpose.xlu1.b32.start [1/2] (short) (narrow) %v1538_v21, 8  ;;  %v2622_v21 = vld [vmem:[#allocation8 + $0x18] sm:$0xff] }
 0x380   : > { %v3620_v24 = vpop.eup %3619 }
 0x381   : > { %1902 = vxpose.xlu0.b32.start [1/2] (short) (narrow) %v1540_v23, 8  ;;  %v1422_v31 = vmul.f32 %v3620_v24, %v4247_v39  ;;  %v3622_v33 = vpop.eup %3621 }
 0x382   : > { %v1544_v62 = vmul.f32 %v3622_v33, %v3608_v27  ;;  %v1545_v39 = vmul.f32 %v3622_v33, %v4312_v29 }
 0x383   : > { %v3624_v34 = vpop.eup %3623  ;;  %1871 = vxpose.xlu1.b32.end [2/2] (short) (narrow) %v1539_v26, 8  ;;  %3357 = vmatprep.mubr.msk.f32.mxu0 %vm794_vm2, %v1422_v31 }
 0x384   : > { %v3626_v35 = vpop.eup %3625  ;;  %v1423_v36 = vmul.f32 %v3624_v34, %v4249_v40 }
 0x385   : > { %1903 = vxpose.xlu0.b32.end [2/2] (short) (narrow) %v1541_v52, 8  ;;  %v1542_v14 = vmul.f32 %v3626_v35, %v3612_v32  ;;  %v1543_v15 = vmul.f32 %v3626_v35, %v4314_v53 }
 0x386   : > { %3358 = vmatmul.mubr.msk.f32.vlgmr.msra.gmra.mrb[8].mxu0 %vm794_vm2, %v1423_v36 }
 0x387   : > { %1966 = vxpose.xlu1.b32.start [1/2] (short) (narrow) %v1544_v62, 8  ;;  %3366 = vmatpush3.msra.mxu0 %v4283_v57 }
 0x388   : > { %3471 = vmatprep.subr.bf16.mxu0 %v3832_v0 }
 0x389   : > { %1934 = vxpose.xlu0.b32.start [1/2] (short) (narrow) %v1542_v14, 8 }
 0x38b   : > { %1967 = vxpose.xlu1.b32.end [2/2] (short) (narrow) %v1545_v39, 8 }
 0x38d   : > { %1935 = vxpose.xlu0.b32.end [2/2] (short) (narrow) %v1543_v15, 8 }
 0x3cf   : > { %v1401_v16 = vpop.xlane.xlu1 %1400 }
 0x3d0   : > { %3627 = vrcp.f32 %v1401_v16  ;;  %v1398_v40 = vpop.xlane.xlu0 %1397 }
 0x3d1   : > { %3629 = vrcp.f32 %v1398_v40 }
 0x3d5   : > { %v1407_v18 = vpop.xlane.xlu1 %1406 }
 0x3d6   : > { %3631 = vrcp.f32 %v1407_v18  ;;  %v1404_v27 = vpop.xlane.xlu0 %1403 }
 0x3d7   : > { %3633 = vrcp.f32 %v1404_v27 }
 0x3d9   : > { %v1413_v32 = vpop.xlane.xlu1 %1412 }
 0x3da   : > { %v3628_v37 = vpop.eup %3627  ;;  %3635 = vrcp.f32 %v1413_v32  ;;  %v1410_v57 = vpop.xlane.xlu0 %1409 }
 0x3db   : > { %v3630_v38 = vpop.eup %3629  ;;  %3637 = vrcp.f32 %v1410_v57  ;;  %v1425_v41 = vmul.f32 %v3628_v37, %v4270_v44 }
 0x3dc   : > { %v1424_v29 = vmul.f32 %v3630_v38, %v4275_v48  ;;  %v3571_v48 = vunpack.i.l.bf16 %v4273_v47 }
 0x3de   : > { %3362 = vmatprep.mubr.msk.f32.mxu1 %vm794_vm2, %v1424_v29  ;;  %v3580_v22 = vpop.permute.xlu0 %3579 }
 0x3df   : > { %3363 = vmatmul.mubr.msk.f32.vlgmr.msra.gmra.mrb[8].mxu1 %vm794_vm2, %v1425_v41  ;;  %v3582_v47 = vunpack.i.h.bf16 %v3580_v22 }
 0x3e0   : > { %v3632_v53 = vpop.eup %3631  ;;  %3371 = vmatpush3.msra.mxu1 %v4292_v4 }
 0x3e1   : > { %v3634_v61 = vpop.eup %3633  ;;  %3474 = vmatprep.subr.bf16.mxu1 %v3832_v0  ;;  %v1427_v45 = vmul.f32 %v3632_v53, %v4286_v60  ;;  %v3202_v53 = vld [vmem:[%s4550_s17] ss:$0 sm:$0xff] }
 0x3e2   : > { %v1426_v42 = vmul.f32 %v3634_v61, %v4288_v63  ;;  %v3475_v63 = vpack.c.bf16 %v3572_v49, %v3571_v48 }
 0x3e4   : > { %v3636_v46 = vpop.eup %3635  ;;  %3367 = vmatprep.mubr.msk.f32.mxu0 %vm794_vm2, %v1426_v42 }
 0x3e5   : > { %v3638_v44 = vpop.eup %3637  ;;  %3368 = vmatmul.mubr.msk.f32.vlgmr.msra.gmra.mrb[10].mxu0 %vm794_vm2, %v1427_v45  ;;  %v1429_v60 = vmul.f32 %v3636_v46, %v4297_v5  ;;  %v3581_v5 = vunpack.i.l.bf16 %v3580_v22 }
 0x3e6   : > { %3473 = vmatpush3.bf16.msra.mxu0 %v3472_v30  ;;  %v1428_v4 = vmul.f32 %v3638_v44, %v4299_v11  ;;  %3379 = vmatprep.mubr.msk.f32.mxu0 %vm3833_vm0, %v3834_v1  ;;  %v3576_v30 = vunpack.i.l.bf16 %v4268_v43 }
 0x3e7   : > { %3477 = vmatprep.subr.bf16.mxu0 %v3832_v0  ;;  %v3481_v51 = vpack.c.bf16 %v3582_v47, %v3581_v5 }
 0x3e8   : > { %3372 = vmatprep.mubr.msk.f32.mxu1 %vm794_vm2, %v1428_v4  ;;  %v3478_v11 = vpack.c.bf16 %v3577_v25, %v3576_v30 }
 0x3e9   : > { %3373 = vmatmul.mubr.msk.f32.vlgmr.msra.gmra.mrb[10].mxu1 %vm794_vm2, %v1429_v60 }
 0x3ea   : > { %3476 = vmatpush3.bf16.msra.mxu1 %v3475_v63  ;;  %3386 = vmatprep.mubr.msk.f32.mxu1 %vm3833_vm0, %v3834_v1 }
 0x3eb   : > { %3480 = vmatprep.subr.bf16.mxu1 %v3832_v0 }
 0x3ff   : > { %v1886_v50 = vpop.trf.xlu1 }
 0x400   : > { %3380 = vmatmul.mubr.msk.f32.vlgmr.msra.gmra.mrb[12].mxu0 %vm1998_vm3, %v1886_v50 }
 0x401   : > { %3479 = vmatpush3.bf16.msra.mxu0 %v3478_v11  ;;  %v1918_v54 = vpop.trf.xlu0  ;;  %3393 = vmatprep.mubr.msk.f32.mxu0 %vm3833_vm0, %v3834_v1 }
 0x402   : > { %3387 = vmatmul.mubr.msk.f32.vlgmr.msra.gmra.mrb[12].mxu1 %vm1998_vm3, %v1918_v54  ;;  %3403 = vmatprep.subr.mxu0 %v2291_v19 }
 0x403   : > { %3482 = vmatpush3.bf16.msra.mxu1 %v3481_v51  ;;  %3400 = vmatprep.mubr.msk.f32.mxu1 %vm3833_vm0, %v3834_v1 }
 0x404   : > { %3408 = vmatprep.subr.mxu1 %v2292_v55 }
 0x407   : > { %v1982_v0 = vpop.trf.xlu1 }
 0x408   : > { %3401 = vmatmul.mubr.msk.f32.vlgmr.msra.gmra.mrb[14].mxu1 %vm1998_vm3, %v1982_v0 }
 0x409   : > { %v1950_v43 = vpop.trf.xlu0  ;;  %3409 = vmatpush3.msra.mxu1 %v2292_v55 }
 0x40a   : > { %3394 = vmatmul.mubr.msk.f32.vlgmr.msra.gmra.mrb[14].mxu0 %vm1998_vm3, %v1950_v43  ;;  %3418 = vmatprep.subr.mxu1 %v2294_v58 }
 0x40b   : > { %3404 = vmatpush3.msra.mxu0 %v2291_v19 }
 0x40c   : > { %3413 = vmatprep.subr.mxu0 %v2293_v17 }
 0x459   : > { %v3359_v59 = vpop.f32.mrb[8].mxu0 }
 0x45a   : > { %v1618_v9 = vpop.f32.mrb[9].mxu0 }
 0x45b   : > { %3405 = vmatprep.mubr.msk.f32.mxu0 %vm794_vm2, %v1618_v9 }
 0x45c   : > { %3406 = vmatmul.mubr.msk.f32.vlgmr.msra.gmra.mrb[16].mxu0 %vm794_vm2, %v3359_v59 }
 0x45d   : > { %3414 = vmatpush3.msra.mxu0 %v2293_v17 }
 0x45e   : > { %3423 = vmatprep.subr.mxu0 %v3834_v1 }
 0x4b2   : > { %v3364_v8 = vpop.f32.mrb[8].mxu1 }
 0x4b3   : > { %v1699_v2 = vpop.f32.mrb[9].mxu1 }
 0x4b4   : > { %3410 = vmatprep.mubr.msk.f32.mxu1 %vm794_vm2, %v1699_v2 }
 0x4b5   : > { %3411 = vmatmul.mubr.msk.f32.vlgmr.msra.gmra.mrb[16].mxu1 %vm794_vm2, %v3364_v8 }
 0x4b6   : > { %3419 = vmatpush3.msra.mxu1 %v2294_v58 }
 0x4b7   : > { %3428 = vmatprep.subr.mxu1 %v3834_v1 }
 0x4b8   : > { %v3369_v3 = vpop.f32.mrb[10].mxu0 }
 0x4b9   : > { %v1780_v6 = vpop.f32.mrb[11].mxu0 }
 0x4ba   : > { %3415 = vmatprep.mubr.msk.f32.mxu0 %vm794_vm2, %v1780_v6 }
 0x4bb   : > { %3416 = vmatmul.mubr.msk.f32.vlgmr.msra.gmra.mrb[18].mxu0 %vm794_vm2, %v3369_v3 }
 0x4bc   : > { %v3374_v56 = vpop.f32.mrb[10].mxu1  ;;  %3424 = vmatpush3.msra.mxu0 %v2619_v7  ;;  %3425 = vmatprep.mubr.msk.f32.mxu0 %vm3833_vm0, %v3834_v1 }
 0x4bd   : > { %v1861_v10 = vpop.f32.mrb[11].mxu1  ;;  %3433 = vmatprep.subr.mxu0 %v3834_v1 }
 0x4be   : > { %3420 = vmatprep.mubr.msk.f32.mxu1 %vm794_vm2, %v1861_v10 }
 0x4bf   : > { %3421 = vmatmul.mubr.msk.f32.vlgmr.msra.gmra.mrb[18].mxu1 %vm794_vm2, %v3374_v56 }
 0x4c0   : > { %3429 = vmatpush3.msra.mxu1 %v2620_v28  ;;  %3430 = vmatprep.mubr.msk.f32.mxu1 %vm3833_vm0, %v3834_v1 }
 0x4c1   : > { %3438 = vmatprep.subr.mxu1 %v3834_v1 }
 0x4d3   : > { %v2068_v13 = vpop.f32.mrb[12].mxu0 }
 0x4d4   : > { %v3381_v20 = vpop.f32.mrb[13].mxu0  ;;  %3426 = vmatmul.mubr.msk.f32.vlgmr.msra.gmra.mrb[20].mxu0 %vm794_vm2, %v2068_v13 }
 0x4d5   : > { %v2141_v23 = vpop.f32.mrb[12].mxu1  ;;  %3434 = vmatpush3.msra.mxu0 %v2621_v12  ;;  %3435 = vmatprep.mubr.msk.f32.mxu0 %vm3833_vm0, %v3834_v1 }
 0x4d6   : > { %v3388_v24 = vpop.f32.mrb[13].mxu1  ;;  %3431 = vmatmul.mubr.msk.f32.vlgmr.msra.gmra.mrb[20].mxu1 %vm794_vm2, %v2141_v23 }
 0x4d7   : > { %3439 = vmatpush3.msra.mxu1 %v2622_v21  ;;  %3440 = vmatprep.mubr.msk.f32.mxu1 %vm3833_vm0, %v3834_v1 }
 0x4db   : > { %v2287_v26 = vpop.f32.mrb[14].mxu1 }
 0x4dc   : > { %v3402_v31 = vpop.f32.mrb[15].mxu1  ;;  %3441 = vmatmul.mubr.msk.f32.vlgmr.msra.gmra.mrb[22].mxu1 %vm794_vm2, %v2287_v26 }
 0x4dd   : > { %v2214_v33 = vpop.f32.mrb[14].mxu0 }
 0x4de   : > { %v3395_v34 = vpop.f32.mrb[15].mxu0  ;;  %3436 = vmatmul.mubr.msk.f32.vlgmr.msra.gmra.mrb[22].mxu0 %vm794_vm2, %v2214_v33 }
 0x52f   : > { %v3407_v52 = vpop.f32.mrb[16].mxu0 }
 0x530   : > { %v2367_v35 = vpop.f32.mrb[17].mxu0  ;;  %v2922_v62 = vsel %vm607_vm1, %v3407_v52, 0.0 }
 0x531   : > { %v2915_v15 = vsel %vm607_vm1, %v2367_v35, 0.0 }
 0x588   : > { %v3412_v36 = vpop.f32.mrb[16].mxu1 }
 0x589   : > { %v2923_v14 = vsel %vm607_vm1, %v3412_v36, 0.0  ;;  %v2448_v39 = vpop.f32.mrb[17].mxu1 }
 0x58a   : > { %v2924_v1 = vadd.f32 %v2923_v14, %v2922_v62  ;;  %v2916_v16 = vsel %vm607_vm1, %v2448_v39, 0.0 }
 0x58b   : > { %v2917_v40 = vadd.f32 %v2916_v16, %v2915_v15 }
 0x58e   : > { %v3417_v18 = vpop.f32.mrb[18].mxu0 }
 0x58f   : > { %v2925_v27 = vsel %vm607_vm1, %v3417_v18, 0.0  ;;  %v2529_v32 = vpop.f32.mrb[19].mxu0 }
 0x590   : > { %v2926_v37 = vadd.f32 %v2925_v27, %v2924_v1  ;;  %v2918_v57 = vsel %vm607_vm1, %v2529_v32, 0.0 }
 0x591   : > { %v2919_v38 = vadd.f32 %v2918_v57, %v2917_v40 }
 0x592   : > { %v3422_v29 = vpop.f32.mrb[18].mxu1 }
 0x593   : > { %v2927_v41 = vsel %vm607_vm1, %v3422_v29, 0.0  ;;  %v2610_v61 = vpop.f32.mrb[19].mxu1 }
 0x594   : > { %v2928_v42 = vadd.f32 %v2927_v41, %v2926_v37  ;;  %v2920_v45 = vsel %vm607_vm1, %v2610_v61, 0.0 }
 0x595   : > { %v2921_v46 = vadd.f32 %v2920_v45, %v2919_v38 }
 0x596   : > { %v2937_v49 = vadd.f32 %v3202_v53, %v2928_v42 }
 0x597   : > { %v2936_v48 = vadd.f32 %v3202_v53, %v2921_v46 }
 0x598   : > { %2939 = vst.msk [vmem:[%s576_s21 + $0x8] sm:$0xff] %vm607_vm1, %v2937_v49 }
 0x599   : > { %2938 = vst.msk [vmem:[%s576_s21] sm:$0xff] %vm607_vm1, %v2936_v48 }
 0x59a   : > { %3736 = shalt.err (!%p3733_p9)
}
 0x59b   : > { %s3737_s27 = scalar_lea.hbm %s4411_s19, 256  ;;  %s3741_s26 = scalar_lea.hbm %s4552_s15, 512 }
 0x59c   : > { %p3738_p2 = scmp.ne.s32.totalorder %s4411_s19, %s3737_s27  ;;  %p3742_p5 = scmp.lt.u32.totalorder %s4411_s19, %s4552_s15 }
 0x59d   : > { %p3743_p10 = scmp.lt.u32.totalorder %s3741_s26, %s3737_s27  ;;  %p3745_p12 = scmp.lt.u32.totalorder %s3737_s27, %s4411_s19 }
 0x59e   : > { %p3739_p0 = pnand %p3738_p2, %p4553_p7 }
 0x59f   : > { %p3744_p4 = por %p3743_p10, %p3742_p5 }
 0x5a0   : > { %p3740_p3 = pneg %p3739_p0 }
 0x5a1   : > { %p3746_p8 = por %p3745_p12, %p3744_p4 }
 0x5a3   : > { %p3747_p11 = pnand %p3746_p8, %p3740_p3 }
 0x5a5   : > { %3750 = shalt.err (!%p3747_p11)
}
 0x5a6   : > { %s3839_s14 = smov 128   ;;  %s3840_s16 = smov 8  }
 0x5a7   : > { %3495 = dma.vmem_to_hbm [thread:$0]  (%p4553_p7), %s4413_s29, 256, %s4411_s19, %s2957_s20, %s3839_s14, %s3839_s14, %s3840_s16   ;;  %v2692_v44 = vpop.f32.mrb[20].mxu0 }
 0x5a8   : > { %v2940_v4 = vsel %vm607_vm1, %v2692_v44, 0.0  ;;  %v3427_v60 = vpop.f32.mrb[21].mxu0  ;;  %s3136_s22 = sshll.u32 %s4397_s18, 3  ;;  %s4554_s20 = sld [smem:[#allocation25_spill]] }
 0x5a9   : > { %v2765_v63 = vpop.f32.mrb[20].mxu1  ;;  %s3208_s0 = sshll.u32 %s3951_s28, 7  ;;  %s583_s30 = scalar_lea.vmem [#allocation10], %s3136_s22 }
 0x5aa   : > { %v2941_v22 = vsel %vm607_vm1, %v2765_v63, 0.0  ;;  %v3432_v25 = vpop.f32.mrb[21].mxu1  ;;  %s2991_s27 = sshll.u32 %s583_s30, 4  ;;  %s4555_s26 = sld [smem:[#allocation27_spill]]  ;;  %s4455_s27 = int_to_ptr.vmem [resolvable:$true] %s2991_s27 }
 0x5ab   : > { %v2942_v30 = vadd.f32 %v2941_v22, %v2940_v4  ;;  %s2962_s14 = scalar_lea.sflag [#allocation11], %s4397_s18  ;;  %s3751_s16 = scalar_lea.vmem %s4455_s27, 128 }
 0x5ac   : > { %p3752_p13 = scmp.ne.s32.totalorder %s4455_s27, %s3751_s16  ;;  %s3841_s28 = smov [#allocation10]  }
 0x5ad   : > { %s3755_s22 = sshll.u32 %s3841_s28, 4  ;;  %s3756_s22 = int_to_ptr.vmem [resolvable:$false] %s3755_s22 }
 0x5ae   : > { %v3203_v0 = vld [vmem:[%s4554_s20] ss:$0 sm:$0xff]  ;;  %p3753_p1 = pnand %p3752_p13, %p4553_p7  ;;  %s3757_s29 = scalar_lea.vmem %s3756_s22, 256 }
 0x5af   : > { %v2911_v47 = vpop.f32.mrb[22].mxu1  ;;  %p3758_p9 = scmp.lt.s32.totalorder %s4455_s27, %s3756_s22  ;;  %p3759_p2 = scmp.lt.s32.totalorder %s3757_s29, %s3751_s16 }
 0x5b0   : > { %v3442_v5 = vpop.f32.mrb[23].mxu1  ;;  %v2945_v51 = vsel %vm607_vm1, %v2911_v47, 0.0  ;;  %s4556_s21 = smov %s4555_s26  ;;  %s4453_s24 = scalar_lea.hbm %s4555_s26, %s3208_s0 }
 0x5b1   : > { %v2838_v11 = vpop.f32.mrb[22].mxu0  ;;  %p3754_p6 = pneg %p3753_p1  ;;  %p3760_p0 = por %p3759_p2, %p3758_p9 }
 0x5b2   : > { %v2943_v50 = vsel %vm607_vm1, %v2838_v11, 0.0  ;;  %v3437_v19 = vpop.f32.mrb[23].mxu0 }
 0x5b3   : > { %v2944_v54 = vadd.f32 %v2943_v50, %v2942_v30  ;;  %p3761_p3 = pnand %p3760_p0, %p3754_p6 }
 0x5b5   : > { %v2946_v43 = vadd.f32 %v2945_v51, %v2944_v54 }
 0x5b7   : > { %v2954_v55 = vadd.f32 %v3203_v0, %v2946_v43 }
 0x5b9   : > { %2955 = vst.msk [vmem:[%s583_s30] sm:$0xff] %vm607_vm1, %v2954_v55 }
 0x5ba   : > { %3764 = shalt.err (!%p3761_p3)
}
 0x5bb   : > { %s3765_s18 = scalar_lea.hbm %s4453_s24, 128  ;;  %s3769_s0 = scalar_lea.hbm %s4556_s21, 256 }
 0x5bc   : > { %p3766_p5 = scmp.ne.s32.totalorder %s4453_s24, %s3765_s18  ;;  %p3770_p12 = scmp.lt.u32.totalorder %s4453_s24, %s4556_s21 }
 0x5bd   : > { %p3771_p8 = scmp.lt.u32.totalorder %s3769_s0, %s3765_s18  ;;  %p3773_p13 = scmp.lt.u32.totalorder %s3765_s18, %s4453_s24 }
 0x5be   : > { %p3767_p10 = pnand %p3766_p5, %p4553_p7 }
 0x5bf   : > { %p3772_p11 = por %p3771_p8, %p3770_p12 }
 0x5c0   : > { %p3768_p4 = pneg %p3767_p10 }
 0x5c1   : > { %p3774_p1 = por %p3773_p13, %p3772_p11 }
 0x5c3   : > { %p3775_p6 = pnand %p3774_p1, %p3768_p4 }
 0x5c5   : > { %3778 = shalt.err (!%p3775_p6)
}
 0x5c6   : > { %3496 = dma.vmem_to_hbm [thread:$0]  (%p4553_p7), %s4455_s27, 128, %s4453_s24, %s2962_s14  }
 0x5c7 PF: > { %s4557_s17 = sld [smem:[#allocation18_spill]]  ;;  %s4558_s26 = sld [smem:[#allocation16_spill]] }
 0x5c8   : > { %s4559_s16 = sld [smem:[#allocation22_spill]] }
 0x5cd   : > { %p3522_p9 = scmp.ge.s32.totalorder %s4557_s17, 2  ;;  %s3003_s28 = sand.u32 1, %s4558_s26  }
 0x5ce   : > { %p4560_p2 = scmp.ne.s32.totalorder %s4559_s16, 0  ;;  %s3004_s22 = scalar_lea.sflag [#allocation5], %s3003_s28 }
 0x5d0   : > { %p3510_p0 = pnand %p3522_p9, %p4560_p2 }
 0x5d2   : > { %3804 = dma.done.wait (!%p3510_p0), %s3004_s22, 256  }
 0x5d3   : > { %3806 = vsyncadd (!%p3510_p0), %s3004_s22, 4294967040  ;;  %s3013_s29 = scalar_lea.sflag [#allocation11], %s3003_s28 }
 0x5d4   : > { %3808 = dma.done.wait (!%p3510_p0), %s3013_s29, 128  }
 0x5d5   : > { %3810 = vsyncadd (!%p3510_p0), %s3013_s29, 4294967168  ;;  %s4561_s27 = sld [smem:[#allocation19_spill]]  ;;  %s4562_s12 = sld [smem:[#allocation17_spill]] }
 0x5d6   : > { %s4563_s26 = sld [smem:[#allocation20_spill]]  ;;  %s4564_s24 = smov %s3817_s25 }
 0x5db   : > { %p33_p7 = scmp.ge.s32.totalorder %s4561_s27, 4   ;;  %s4565_s25 = smov %s4562_s12 }
 0x5dd   :  { %35 = sbr.rel (!%p33_p7) target bundleno = 16 (0x10), region = 148 }
 0x5e4   :  { %3018 = vsyncpa [#allocation4], 1 }
 0x5e5   :  { %3020 = vsyncpa [#allocation4 + $0x1], 1 }
 0x5e6   :  { %3021 = vsyncpa [#allocation7], 1 }
 0x5e7   :  { %3022 = vsyncpa [#allocation5], 1 }
 0x5e8   :  { %3024 = vsyncpa [#allocation5 + $0x1], 1 }
 0x5e9   :  { %3025 = vsyncpa [#allocation11], 1 }
 0x5ea   :  { %3027 = vsyncpa [#allocation11 + $0x1], 1 }

</bundles_post_ra>
